<compile_context>
chip_gen: v7x
topology: tpu7x:2x2x1
jax: 0.10.0
libtpu: 0.0.40
codegen_flags: <defaults>
</compile_context>

<pallas_src>
import functools

import jax
import jax.numpy as jnp
from jax import lax
from jax.experimental import pallas as pl
from jax.experimental.pallas import tpu as pltpu


def _attention_kernel(x_q_ref, x_kv_ref, w_q_ref, w_kv_ref, *rest,
                      num_heads, scale, has_qkv_bias):
    if has_qkv_bias:
        b_q_ref, b_kv_ref, w_proj_ref, b_proj_ref, o_ref, kv_ref = rest
    else:
        b_q_ref = b_kv_ref = None
        w_proj_ref, b_proj_ref, o_ref, kv_ref = rest

    tq, C = x_q_ref.shape
    N = x_kv_ref.shape[0]
    H = num_heads
    d = C // H
    mx_dtype = x_q_ref.dtype       # native dtype fed to the MXU (bf16 or f32)

    # TODO(synk): the `mask_type`/`head` qkv-masking branch and the `static_a`
    # positional-bias branch of OldAttention.forward are not implemented
    # (defaults mask_type=None, static=False).  Dropout p=0 is identity.

    # ---- K/V projection: once per batch element, cached across query tiles ----
    @pl.when(pl.program_id(1) == 0)
    def _():
        kv = jnp.dot(x_kv_ref[...], w_kv_ref[...],
                     preferred_element_type=jnp.float32)
        if has_qkv_bias:
            kv = kv + b_kv_ref[...]
        kv_ref[...] = kv.astype(kv_ref.dtype)

    # ---- Q projection for this query tile (f32 accumulate, scale folded in) ----
    q = jnp.dot(x_q_ref[...], w_q_ref[...], preferred_element_type=jnp.float32)
    if has_qkv_bias:
        q = q + b_q_ref[...]
    q = (q * scale).astype(mx_dtype).reshape(tq, H, d)

    kv = kv_ref[...]
    k = kv[:, :C].reshape(N, H, d)
    v = kv[:, C:].reshape(N, H, d)

    # ---- scores for all heads in one batched contraction: (H, tq, N) ----
    s = jnp.einsum('qhd,khd->hqk', q, k, preferred_element_type=jnp.float32)

    # numerically-stable softmax along keys; normalization deferred past attn@v
    s = s - jnp.max(s, axis=-1, keepdims=True)
    e = jnp.exp(s)
    denom = jnp.sum(e, axis=-1, keepdims=True)              # (H, tq, 1)

    # ---- context for all heads in one batched contraction: (H, tq, d) ----
    ctx = jnp.einsum('hqk,khd->hqd', e.astype(mx_dtype), v,
                     preferred_element_type=jnp.float32)
    ctx = ctx * (1.0 / denom)            # exact; H*tq divides instead of H*tq*N
    ctx = ctx.transpose(1, 0, 2).reshape(tq, C).astype(mx_dtype)

    # ---- output projection; single lane-dense store of the result tile ----
    out = jnp.dot(ctx, w_proj_ref[...], preferred_element_type=jnp.float32)
    out = out + b_proj_ref[...]
    o_ref[...] = out.astype(o_ref.dtype)


def _const_spec(shape):
    """BlockSpec for a grid-invariant operand; single-buffered when supported."""
    index_map = lambda b, qi: (0,) * len(shape)
    try:
        return pl.BlockSpec(shape, index_map, pipeline_mode=pl.Buffered(1))
    except TypeError:      # older jax without pipeline_mode on BlockSpec
        return pl.BlockSpec(shape, index_map)


def old_attention(x, w_qkv, b_qkv, w_proj, b_proj, *, num_heads,
                  qk_scale=None, q_tile=None):
    """OldAttention.forward (mask_type=None, static=False, dropout=0).

    x:      (B, N, C)
    w_qkv:  (C, 3C)        -- torch Linear weight transposed to (in, out)
    b_qkv:  (3C,) or None  -- None when qkv_bias=False (add skipped entirely)
    w_proj: (C, out_dim)
    b_proj: (out_dim,)
    """
    B, N, C = x.shape
    out_dim = w_proj.shape[1]
    head_dim = C // num_heads
    scale = qk_scale if qk_scale is not None else head_dim ** (-0.5)
    has_qkv_bias = b_qkv is not None

    # Query tile size: full sequence for small N, 128-row tiles otherwise.
    if q_tile is None:
        tq = 128 if (N % 128 == 0) else N
    else:
        tq = q_tile
    assert N % tq == 0, "q_tile must divide N"
    n_qt = N // tq

    # Split the fused qkv weight so only the q part is applied per query tile.
    w_q = w_qkv[:, :C]
    w_kv = w_qkv[:, C:]

    inputs = [x, x, w_q, w_kv]
    in_specs = [
        pl.BlockSpec((None, tq, C), lambda b, qi: (b, qi, 0)),   # x: query tile
        pl.BlockSpec((None, N, C), lambda b, qi: (b, 0, 0)),     # x: full seq (K/V)
        _const_spec((C, C)),                                     # Wq
        _const_spec((C, 2 * C)),                                 # Wkv
    ]
    if has_qkv_bias:
        inputs += [b_qkv[:C].reshape(1, C), b_qkv[C:].reshape(1, 2 * C)]
        in_specs += [_const_spec((1, C)), _const_spec((1, 2 * C))]
    inputs += [w_proj, b_proj.reshape(1, out_dim)]
    in_specs += [_const_spec((C, out_dim)), _const_spec((1, out_dim))]

    kernel = functools.partial(_attention_kernel, num_heads=num_heads,
                               scale=scale, has_qkv_bias=has_qkv_bias)

    itemsize = jnp.dtype(x.dtype).itemsize
    w_itemsize = jnp.dtype(w_qkv.dtype).itemsize

    # Advisory cost for XLA scheduling (real dtypes).
    flops = int(B * (2 * N * C * 3 * C            # qkv projection
                     + 2 * N * N * C              # q @ k^T over all heads
                     + 2 * N * N * C              # attn @ v over all heads
                     + 2 * N * C * out_dim))      # output projection
    bytes_accessed = int(
        2 * x.size * itemsize                                   # x read for Q tiles + K/V
        + (w_qkv.size + w_proj.size + out_dim
           + (3 * C if has_qkv_bias else 0)) * w_itemsize
        + B * N * out_dim * itemsize)                           # output
    cost = pl.CostEstimate(flops=flops,
                           transcendentals=int(B * num_heads * N * N),
                           bytes_accessed=bytes_accessed)

    # Explicit VMEM budget: single-buffered weights, double-buffered x/out
    # blocks, K/V scratch, f32 intermediates; 2x headroom, capped at 64 MiB so
    # the same config fits v7x (64 MiB physical) as well as v5e/v6e.
    const_bytes = (w_qkv.size + w_proj.size + out_dim
                   + (3 * C if has_qkv_bias else 0)) * w_itemsize
    stream_bytes = 2 * (tq * C + N * C + tq * out_dim) * itemsize
    scratch_bytes = N * 2 * C * itemsize
    interm_bytes = 4 * (2 * num_heads * tq * N + tq * 3 * C + N * 2 * C
                        + tq * out_dim)
    vmem_limit = int(min(max(2 * (const_bytes + stream_bytes + scratch_bytes
                                  + interm_bytes), 16 << 20), 64 << 20))

    return pl.pallas_call(
        kernel,
        out_shape=jax.ShapeDtypeStruct((B, N, out_dim), x.dtype),
        grid_spec=pltpu.PrefetchScalarGridSpec(
            num_scalar_prefetch=0,
            grid=(B, n_qt),
            in_specs=in_specs,
            out_specs=pl.BlockSpec((None, tq, out_dim), lambda b, qi: (b, qi, 0)),
            scratch_shapes=[pltpu.VMEM((N, 2 * C), x.dtype)],   # cached K/V proj
        ),
        compiler_params=pltpu.CompilerParams(
            # batch split across TCs; query tiles sequential (reuse cached K/V)
            dimension_semantics=("parallel", "arbitrary"),
            vmem_limit_bytes=vmem_limit,
        ),
        cost_estimate=cost,
    )(*inputs)


def _reference(x, w_qkv, b_qkv, w_proj, b_proj, num_heads, scale):
    """Pure-JAX replica of OldAttention.forward (high-precision matmuls)."""
    B, N, C = x.shape
    d = C // num_heads
    hp = lax.Precision.HIGHEST
    qkv = jnp.einsum('bnc,ck->bnk', x, w_qkv, precision=hp)
    if b_qkv is not None:
        qkv = qkv + b_qkv
    qkv = qkv.reshape(B, N, 3, num_heads, d).transpose(2, 0, 3, 1, 4)
    q, k, v = qkv[0], qkv[1], qkv[2]
    attn = jnp.einsum('bhnd,bhmd->bhnm', q, k, precision=hp) * scale
    attn = jax.nn.softmax(attn, axis=-1)
    ctx = jnp.einsum('bhnm,bhmd->bhnd', attn, v, precision=hp)
    ctx = ctx.transpose(0, 2, 1, 3).reshape(B, N, C)
    return jnp.einsum('bnc,co->bno', ctx, w_proj, precision=hp) + b_proj


if __name__ == "__main__":
    key = jax.random.PRNGKey(0)

    # Small shapes consistent with the module: dim=64, num_heads=8 (head_dim=8),
    # out_dim=dim, seq=16, batch=2.
    B, N, C = 2, 16, 64
    num_heads = 8
    out_dim = C
    scale = (C // num_heads) ** (-0.5)

    k_x, k_wqkv, k_bqkv, k_wproj, k_bproj = jax.random.split(key, 5)
    x = jax.random.normal(k_x, (B, N, C), dtype=jnp.float32)
    # Weights stored as (in, out): equivalent to torch Linear weight transposed.
    w_qkv = jax.random.normal(k_wqkv, (C, 3 * C), dtype=jnp.float32) * 0.1
    w_proj = jax.random.normal(k_wproj, (C, out_dim), dtype=jnp.float32) * 0.1
    b_proj = jax.random.normal(k_bproj, (out_dim,), dtype=jnp.float32) * 0.1

    # Path 1: qkv_bias=False (module default) — bias input skipped entirely.
    out = old_attention(x, w_qkv, None, w_proj, b_proj, num_heads=num_heads)
    jax.block_until_ready(out)
    ref = _reference(x, w_qkv, None, w_proj, b_proj, num_heads, scale)
    assert jnp.allclose(out, ref, atol=5e-4, rtol=5e-4), "mismatch (no qkv bias)"

    # Path 2: qkv_bias=True.
    b_qkv = jax.random.normal(k_bqkv, (3 * C,), dtype=jnp.float32) * 0.1
    out_b = old_attention(x, w_qkv, b_qkv, w_proj, b_proj, num_heads=num_heads)
    jax.block_until_ready(out_b)
    ref_b = _reference(x, w_qkv, b_qkv, w_proj, b_proj, num_heads, scale)
    assert jnp.allclose(out_b, ref_b, atol=5e-4, rtol=5e-4), "mismatch (qkv bias)"

    print("KERNEL_OK")
</pallas_src>

<mosaic_0001>
module attributes {stable_mosaic.version = 11 : i64} {
  func.func @_attention_kernel(%arg0: i32, %arg1: i32, %arg2: memref<1x16x64xf32, #tpu.memory_space<vmem>>, %arg3: memref<1x16x64xf32, #tpu.memory_space<vmem>>, %arg4: memref<64x64xf32, #tpu.memory_space<vmem>>, %arg5: memref<64x128xf32, #tpu.memory_space<vmem>>, %arg6: memref<64x64xf32, #tpu.memory_space<vmem>>, %arg7: memref<1x64xf32, #tpu.memory_space<vmem>>, %arg8: memref<1x16x64xf32, #tpu.memory_space<vmem>>, %arg9: memref<16x128xf32, #tpu.memory_space<vmem>>) attributes {dimension_semantics = [#tpu.dimension_semantics<parallel>, #tpu.dimension_semantics<arbitrary>], iteration_bounds = array<i64: 2, 1>, scalar_prefetch = 0 : i64, scratch_operands = 1 : i64, tpu.core_type = #tpu.core_type<tc>, window_params = [{transform_indices = @transform_0, window_bounds = array<i64: 1, 16, 64>}, {transform_indices = @transform_1, window_bounds = array<i64: 1, 16, 64>}, {pipeline_mode = #tpu.pipeline_mode<synchronous>, transform_indices = @transform_2, window_bounds = array<i64: 64, 64>}, {pipeline_mode = #tpu.pipeline_mode<synchronous>, transform_indices = @transform_3, window_bounds = array<i64: 64, 128>}, {pipeline_mode = #tpu.pipeline_mode<synchronous>, transform_indices = @transform_4, window_bounds = array<i64: 64, 64>}, {pipeline_mode = #tpu.pipeline_mode<synchronous>, transform_indices = @transform_5, window_bounds = array<i64: 1, 64>}, {transform_indices = @transform_6, window_bounds = array<i64: 1, 16, 64>}]} {
    %c0_i32 = arith.constant 0 : i32
    %0 = arith.cmpi eq, %arg1, %c0_i32 : i32
    %1 = arith.extui %0 : i1 to i32
    %c0_i32_0 = arith.constant 0 : i32
    %2 = arith.cmpi ne, %1, %c0_i32_0 : i32
    scf.if %2 {
      %c0_21 = arith.constant 0 : index
      %c0_22 = arith.constant 0 : index
      %c0_23 = arith.constant 0 : index
      %38 = vector.load %arg3[%c0_21, %c0_22, %c0_23] : memref<1x16x64xf32, #tpu.memory_space<vmem>>, vector<1x16x64xf32>
      %39 = vector.shape_cast %38 : vector<1x16x64xf32> to vector<16x64xf32>
      %c0_24 = arith.constant 0 : index
      %c0_25 = arith.constant 0 : index
      %40 = vector.load %arg5[%c0_24, %c0_25] : memref<64x128xf32, #tpu.memory_space<vmem>>, vector<64x128xf32>
      %cst_26 = arith.constant dense<0.000000e+00> : vector<16x128xf32>
      %41 = tpu.matmul %39, %40, %cst_26 {dimension_numbers = #tpu.dot_dimension_numbers<[1], [0], [0], [1], [0, 0, 1, 1], [], []>} : vector<16x64xf32>, vector<64x128xf32>, vector<16x128xf32> -> vector<16x128xf32>
      %c0_27 = arith.constant 0 : index
      %c0_28 = arith.constant 0 : index
      %42 = vector.load %arg9[%c0_27, %c0_28] : memref<16x128xf32, #tpu.memory_space<vmem>>, vector<16x128xf32>
      tpu.vector_store %arg9[%c0_27, %c0_28], %41 {strides = array<i32>} : memref<16x128xf32, #tpu.memory_space<vmem>>, vector<16x128xf32>,
    } else {
    }
    %c0 = arith.constant 0 : index
    %c0_1 = arith.constant 0 : index
    %c0_2 = arith.constant 0 : index
    %3 = vector.load %arg2[%c0, %c0_1, %c0_2] : memref<1x16x64xf32, #tpu.memory_space<vmem>>, vector<1x16x64xf32>
    %4 = vector.shape_cast %3 : vector<1x16x64xf32> to vector<16x64xf32>
    %c0_3 = arith.constant 0 : index
    %c0_4 = arith.constant 0 : index
    %5 = vector.load %arg4[%c0_3, %c0_4] : memref<64x64xf32, #tpu.memory_space<vmem>>, vector<64x64xf32>
    %cst = arith.constant dense<0.000000e+00> : vector<16x64xf32>
    %6 = tpu.matmul %4, %5, %cst {dimension_numbers = #tpu.dot_dimension_numbers<[1], [0], [0], [1], [0, 0, 1, 1], [], []>} : vector<16x64xf32>, vector<64x64xf32>, vector<16x64xf32> -> vector<16x64xf32>
    %cst_5 = arith.constant 0.353553385 : f32
    %7 = vector.broadcast %cst_5 : f32 to vector<16x64xf32>
    %8 = arith.mulf %6, %7 : vector<16x64xf32>
    %9 = vector.shape_cast %8 : vector<16x64xf32> to vector<16x8x8xf32>
    %c0_6 = arith.constant 0 : index
    %c0_7 = arith.constant 0 : index
    %10 = vector.load %arg9[%c0_6, %c0_7] : memref<16x128xf32, #tpu.memory_space<vmem>>, vector<16x128xf32>
    %11 = vector.extract_strided_slice %10 {offsets = [0, 0], sizes = [16, 64], strides = [1, 1]} : vector<16x128xf32> to vector<16x64xf32>
    %12 = vector.shape_cast %11 : vector<16x64xf32> to vector<16x8x8xf32>
    %13 = vector.extract_strided_slice %10 {offsets = [0, 64], sizes = [16, 64], strides = [1, 1]} : vector<16x128xf32> to vector<16x64xf32>
    %14 = vector.shape_cast %13 : vector<16x64xf32> to vector<16x8x8xf32>
    "tpu.trace_start"() <{level = 10 : i32, message = "qhd,khd->hqk"}> : () -> ()
    %cst_8 = arith.constant dense<0.000000e+00> : vector<8x16x16xf32>
    %15 = tpu.matmul %9, %12, %cst_8 {dimension_numbers = #tpu.dot_dimension_numbers<[2], [2], [0], [0], [0, 1, 0, 0, 1, 0], [1], [1]>} : vector<16x8x8xf32>, vector<16x8x8xf32>, vector<8x16x16xf32> -> vector<8x16x16xf32>
    "tpu.trace_stop"() : () -> ()
    %cst_9 = arith.constant dense<0xFF800000> : vector<8x16xf32>
    %16 = vector.multi_reduction <maximumf>, %15, %cst_9 [2] : vector<8x16x16xf32> to vector<8x16xf32>
    %17 = vector.shape_cast %16 : vector<8x16xf32> to vector<8x16x1xf32>
    %18 = vector.broadcast %17 : vector<8x16x1xf32> to vector<8x16x16xf32>
    %19 = arith.subf %15, %18 : vector<8x16x16xf32>
    %20 = math.exp %19 : vector<8x16x16xf32>
    %cst_10 = arith.constant dense<0.000000e+00> : vector<8x16xf32>
    %21 = vector.multi_reduction <add>, %20, %cst_10 [2] : vector<8x16x16xf32> to vector<8x16xf32>
    %22 = vector.shape_cast %21 : vector<8x16xf32> to vector<8x16x1xf32>
    "tpu.trace_start"() <{level = 10 : i32, message = "hqk,khd->hqd"}> : () -> ()
    %cst_11 = arith.constant dense<0.000000e+00> : vector<8x16x8xf32>
    %23 = tpu.matmul %20, %14, %cst_11 {dimension_numbers = #tpu.dot_dimension_numbers<[2], [0], [1], [2], [0, 0, 0, 1, 1, 2], [0], [1]>} : vector<8x16x16xf32>, vector<16x8x8xf32>, vector<8x16x8xf32> -> vector<8x16x8xf32>
    "tpu.trace_stop"() : () -> ()
    %cst_12 = arith.constant 1.000000e+00 : f32
    %24 = vector.broadcast %cst_12 : f32 to vector<8x16x1xf32>
    %25 = arith.divf %24, %22 : vector<8x16x1xf32>
    %26 = vector.broadcast %25 : vector<8x16x1xf32> to vector<8x16x8xf32>
    %27 = arith.mulf %23, %26 : vector<8x16x8xf32>
    %28 = tpu.transpose %27, [1, 0, 2] : vector<8x16x8xf32> -> vector<16x8x8xf32>
    %29 = vector.shape_cast %28 : vector<16x8x8xf32> to vector<16x64xf32>
    %c0_13 = arith.constant 0 : index
    %c0_14 = arith.constant 0 : index
    %30 = vector.load %arg6[%c0_13, %c0_14] : memref<64x64xf32, #tpu.memory_space<vmem>>, vector<64x64xf32>
    %cst_15 = arith.constant dense<0.000000e+00> : vector<16x64xf32>
    %31 = tpu.matmul %29, %30, %cst_15 {dimension_numbers = #tpu.dot_dimension_numbers<[1], [0], [0], [1], [0, 0, 1, 1], [], []>} : vector<16x64xf32>, vector<64x64xf32>, vector<16x64xf32> -> vector<16x64xf32>
    %c0_16 = arith.constant 0 : index
    %c0_17 = arith.constant 0 : index
    %32 = vector.load %arg7[%c0_16, %c0_17] : memref<1x64xf32, #tpu.memory_space<vmem>>, vector<1x64xf32>
    %33 = vector.broadcast %32 : vector<1x64xf32> to vector<16x64xf32>
    %34 = arith.addf %31, %33 : vector<16x64xf32>
    %c0_18 = arith.constant 0 : index
    %c0_19 = arith.constant 0 : index
    %c0_20 = arith.constant 0 : index
    %35 = vector.load %arg8[%c0_18, %c0_19, %c0_20] : memref<1x16x64xf32, #tpu.memory_space<vmem>>, vector<1x16x64xf32>
    %36 = vector.shape_cast %35 : vector<1x16x64xf32> to vector<16x64xf32>
    %37 = vector.shape_cast %34 : vector<16x64xf32> to vector<1x16x64xf32>
    tpu.vector_store %arg8[%c0_18, %c0_19, %c0_20], %37 {strides = array<i32>} : memref<1x16x64xf32, #tpu.memory_space<vmem>>, vector<1x16x64xf32>,
    return
  }
  func.func @transform_0(%arg0: i32, %arg1: i32) -> (i32, i32, i32) {
    %c0_i32 = arith.constant 0 : i32
    %c0_i32_0 = arith.constant 0 : i32
    return %arg0, %arg1, %c0_i32 : i32, i32, i32
  }
  func.func @transform_1(%arg0: i32, %arg1: i32) -> (i32, i32, i32) {
    %c0_i32 = arith.constant 0 : i32
    %c0_i32_0 = arith.constant 0 : i32
    %c0_i32_1 = arith.constant 0 : i32
    return %arg0, %c0_i32, %c0_i32_0 : i32, i32, i32
  }
  func.func @transform_2(%arg0: i32, %arg1: i32) -> (i32, i32) {
    %c0_i32 = arith.constant 0 : i32
    %c0_i32_0 = arith.constant 0 : i32
    %c0_i32_1 = arith.constant 0 : i32
    return %c0_i32, %c0_i32_0 : i32, i32
  }
  func.func @transform_3(%arg0: i32, %arg1: i32) -> (i32, i32) {
    %c0_i32 = arith.constant 0 : i32
    %c0_i32_0 = arith.constant 0 : i32
    %c0_i32_1 = arith.constant 0 : i32
    return %c0_i32, %c0_i32_0 : i32, i32
  }
  func.func @transform_4(%arg0: i32, %arg1: i32) -> (i32, i32) {
    %c0_i32 = arith.constant 0 : i32
    %c0_i32_0 = arith.constant 0 : i32
    %c0_i32_1 = arith.constant 0 : i32
    return %c0_i32, %c0_i32_0 : i32, i32
  }
  func.func @transform_5(%arg0: i32, %arg1: i32) -> (i32, i32) {
    %c0_i32 = arith.constant 0 : i32
    %c0_i32_0 = arith.constant 0 : i32
    %c0_i32_1 = arith.constant 0 : i32
    return %c0_i32, %c0_i32_0 : i32, i32
  }
  func.func @transform_6(%arg0: i32, %arg1: i32) -> (i32, i32, i32) {
    %c0_i32 = arith.constant 0 : i32
    %c0_i32_0 = arith.constant 0 : i32
    return %arg0, %arg1, %c0_i32 : i32, i32, i32
  }
}

</mosaic_0001>

<bundles_post_ra>
// kernel: tpu_custom_call.1
= control target key start
LH: loop header
LB: loop body
LE: loop exit
PB: predicated region body
PF: predicated region fallthrough
CT: control target
= control target key end

     0   :  { %s4903_s0 = inlined_call_operand.hbm [shape: f32[2,16,64], index: 0, kind: input, shape index: {}]   ;;  %s4904_s1 = inlined_call_operand.hbm [shape: f32[2,16,64], index: 1, kind: input, shape index: {}]   ;;  %s4905_s2 = inlined_call_operand.hbm [shape: f32[64,64], index: 2, kind: input, shape index: {}]   ;;  %s4906_s3 = inlined_call_operand.hbm [shape: f32[64,128], index: 3, kind: input, shape index: {}]   ;;  %s4907_s4 = inlined_call_operand.hbm [shape: f32[64,64], index: 4, kind: input, shape index: {}]   ;;  %s4908_s5 = inlined_call_operand.vmem [shape: f32[1,64], index: 5, kind: input, shape index: {}]   ;;  %s4909_s6 = inlined_call_operand.hbm [shape: f32[2,16,64], index: 6, kind: output, shape index: {}]  }
   0x1   :  { %4919 = sst [smem:[#allocation20_spill]] %s4903_s0 }
   0x2   :  { %4920 = sst [smem:[#allocation21_spill]] %s4905_s2 }
   0x3   :  { %4921 = sst [smem:[#allocation22_spill]] %s4906_s3 }
   0x4   :  { %11 = vsyncpa [#allocation4], 0 }
   0x5   :  { %13 = vsyncpa [#allocation4 + $0x1], 0 }
   0x6   :  { %14 = vsyncpa [#allocation7], 0 }
   0x7   :  { %16 = vsyncpa [#allocation7 + $0x1], 0 }
   0x8   :  { %17 = vsyncpa [#allocation10], 0 }
   0x9   :  { %18 = vsyncpa [#allocation5], 0 }
   0xa   :  { %20 = vsyncpa [#allocation5 + $0x1], 0  ;;  %s4216_s21 = smov 0   ;;  %s4218_s22 = smov 0  }
   0xb   :  { %s4220_s23 = smov 0   ;;  %s4222_s24 = smov 0  }
   0xc   :  { %s4224_s25 = smov 0   ;;  %s4226_s26 = smov 0  }
   0xd LB: > { %4922 = sst [smem:[#allocation18_spill]] %s4133_s21  ;;  %s4247_s27 = sadd.s32 4294967295, %s4153_s26   ;;  %s4153_s26 = sphi %s4226_s26, %s26_s26   ;;  %s4149_s25 = sphi %s4224_s25, %s4951_s25   ;;  %s4145_s24 = sphi %s4222_s24, %s4950_s24   ;;  %s4141_s23 = sphi %s4220_s23, %s4949_s23   ;;  %s4137_s22 = sphi %s4218_s22, %s4948_s22   ;;  %s4133_s21 = sphi %s4216_s21, %s4947_s21  }
   0xe   : > { %s3291_s28 = sadd.s32 4294967294, %s4153_s26   ;;  %p60_p0 = scmp.ne.s32.totalorder %s4137_s22, %s4133_s21 }
   0xf   : > { %p4910_p1 = scmp.eq.s32.totalorder %s4247_s27, 0  ;;  %p202_p3 = scmp.eq.s32.totalorder %s3291_s28, 1 }
  0x10   : > { %p3292_p5 = scmp.ge.s32.totalorder %s4153_s26, 1  ;;  %p209_p7 = scmp.lt.s32.totalorder %s4153_s26, 3 }
  0x11   : > { %p4256_p4 = por %p4910_p1, %p60_p0  ;;  %p4261_p6 = por %p202_p3, %p60_p0 }
  0x12   : > { %p4266_p8 = pnand %p3292_p5, %p209_p7  ;;  %s4155_s8 = smov [#allocation8]  }
  0x13   : > { %s4923_s29 = scalar_select %p4256_p4, 1, 0 }
  0x14   : > { %s4924_s30 = scalar_select %p4261_p6, 1, 0 }
  0x15   : > { %s4926_s7 = scalar_select %p4266_p8, 1, 0 }
  0x16   : > { %4925 = sst [smem:[#allocation19_spill]] %s4924_s30  ;;  %s221_s9 = sshll.u32 %s4155_s8, 4  ;;  %s4270_s9 = int_to_ptr.vmem [resolvable:$true] %s221_s9 }
  0x17   : > { %p3710_p9 = pneg %p4266_p8  ;;  %s4156_s11 = smov [#allocation9]  }
  0x18   : > { %s234_s12 = sshll.u32 %s4156_s11, 4  ;;  %s4157_s13 = smov [#allocation11]   ;;  %s4281_s12 = int_to_ptr.vmem [resolvable:$true] %s234_s12 }
  0x19   : > { %p4277_p11 = pnand %p3710_p9, %p4910_p1  ;;  %s4283_s14 = sshll.u32 %s4157_s13, 4  ;;  %s248_s14 = int_to_ptr.vmem [resolvable:$true] %s4283_s14 }
  0x1a   : > { %s4928_s2 = sld [smem:[#allocation21_spill]] }
  0x1b   : > { %p4293_p13 = pneg %p4277_p11 }
  0x20   : > { %s3915_s17 = scalar_lea.hbm %s4928_s2, 1024 }
  0x21   : > { %p3916_p12 = scmp.ne.s32.totalorder %s4928_s2, %s3915_s17  ;;  %p3922_p5 = scmp.lt.u32.totalorder %s3915_s17, %s4928_s2 }
  0x23   : > { %p3918_p0 = pnand %p4293_p13, %p3916_p12 }
  0x25   : > { %p3919_p3 = pneg %p3918_p0 }
  0x27   : > { %p3924_p7 = pnand %p3922_p5, %p3919_p3 }
  0x29   : > { %3927 = shalt.err (!%p3924_p7)
}
  0x2a   : > { %s3928_s11 = scalar_lea.vmem %s4270_s9, 1024  ;;  %p3936_p2 = scmp.lt.s32.totalorder %s4270_s9, %s4270_s9 }
  0x2b   : > { %p3929_p9 = scmp.ne.s32.totalorder %s4270_s9, %s3928_s11  ;;  %p3937_p6 = scmp.lt.s32.totalorder %s3928_s11, %s3928_s11 }
  0x2d   : > { %p3931_p10 = pnand %p3929_p9, %p4293_p13  ;;  %p3938_p12 = por %p3937_p6, %p3936_p2 }
  0x2f   : > { %p3932_p1 = pneg %p3931_p10 }
  0x31   : > { %p3939_p0 = pnand %p3938_p12, %p3932_p1 }
  0x33   : > { %3942 = shalt.err (!%p3939_p0)
}
  0x34   : > { %s4915_s13 = smov 128   ;;  %s4917_s15 = smov 8  }
  0x35   : > { %3713 = dma.hbm_to_vmem [thread:$0]  (!%p4277_p11), %s4928_s2, 1024, %s4270_s9, [#allocation7], %s4915_s13, %s4915_s13, %s4917_s15  }
  0x36   : > { %s4930_s3 = sld [smem:[#allocation22_spill]] }
  0x3c   : > { %s3943_s28 = scalar_lea.hbm %s4930_s3, 1024 }
  0x3d   : > { %p3944_p1 = scmp.ne.s32.totalorder %s4930_s3, %s3943_s28  ;;  %p3950_p10 = scmp.lt.u32.totalorder %s3943_s28, %s4930_s3 }
  0x3f   : > { %p3946_p2 = pnand %p3944_p1, %p4293_p13 }
  0x41   : > { %p3947_p6 = pneg %p3946_p2 }
  0x43   : > { %p3952_p3 = pnand %p3950_p10, %p3947_p6 }
  0x45   : > { %3955 = shalt.err (!%p3952_p3)
}
  0x46   : > { %s3956_s9 = scalar_lea.vmem %s4281_s12, 1024  ;;  %p3964_p12 = scmp.lt.s32.totalorder %s4281_s12, %s4281_s12 }
  0x47   : > { %p3957_p5 = scmp.ne.s32.totalorder %s4281_s12, %s3956_s9  ;;  %p3965_p0 = scmp.lt.s32.totalorder %s3956_s9, %s3956_s9 }
  0x49   : > { %p3959_p7 = pnand %p3957_p5, %p4293_p13  ;;  %p3966_p1 = por %p3965_p0, %p3964_p12 }
  0x4b   : > { %p3960_p9 = pneg %p3959_p7 }
  0x4d   : > { %p3967_p2 = pnand %p3966_p1, %p3960_p9 }
  0x4f   : > { %3970 = shalt.err (!%p3967_p2)
}
  0x50   : > { %3716 = dma.hbm_to_vmem [thread:$0]  (!%p4277_p11), %s4930_s3, 1024, %s4281_s12, [#allocation10], %s4915_s13, %s4915_s13, %s4917_s15  }
  0x51   : > { %s3971_s18 = scalar_lea.hbm %s4907_s4, 1024 }
  0x52   : > { %p3972_p6 = scmp.ne.s32.totalorder %s4907_s4, %s3971_s18  ;;  %p3978_p5 = scmp.lt.u32.totalorder %s3971_s18, %s4907_s4 }
  0x54   : > { %p3974_p10 = pnand %p3972_p6, %p4293_p13 }
  0x56   : > { %p3975_p3 = pneg %p3974_p10 }
  0x58   : > { %p3980_p7 = pnand %p3978_p5, %p3975_p3 }
  0x5a   : > { %3983 = shalt.err (!%p3980_p7)
}
  0x5b   : > { %s3984_s9 = scalar_lea.vmem %s248_s14, 1024  ;;  %p3992_p1 = scmp.lt.s32.totalorder %s248_s14, %s248_s14 }
  0x5c   : > { %p3985_p9 = scmp.ne.s32.totalorder %s248_s14, %s3984_s9  ;;  %p3993_p2 = scmp.lt.s32.totalorder %s3984_s9, %s3984_s9 }
  0x5e   : > { %p3987_p12 = pnand %p3985_p9, %p4293_p13  ;;  %p3994_p4 = por %p3993_p2, %p3992_p1 }
  0x60   : > { %p3988_p0 = pneg %p3987_p12 }
  0x62   : > { %p3995_p8 = pnand %p3994_p4, %p3988_p0 }
  0x64   : > { %3998 = shalt.err (!%p3995_p8)
}
  0x65   : > { %3719 = dma.hbm_to_vmem [thread:$0]  (!%p4277_p11), %s4907_s4, 1024, %s248_s14, [#allocation10], %s4915_s13, %s4915_s13, %s4917_s15  }
  0x66   : > { %s47_s20 = sadd.s32 1, %s4141_s23  ;;  %s38_s10 = sadd.s32 1, %s4149_s25 }
  0x67   : > { %p54_p4 = scmp.ne.s32.totalorder %s4141_s23, %s4137_s22  ;;  %p40_p8 = scmp.ge.s32.totalorder %s38_s10, 2 }
  0x68   : > { %p55_p13 = scmp.eq.s32.totalorder %s4153_s26, 0  ;;  %p4931_p6 = scmp.eq.s32.totalorder %s4247_s27, 1 }
  0x69   : > { %p3734_p3 = scmp.lt.s32.totalorder %s4153_s26, 2  ;;  %s4953_s10 = smov (%p40_p8, %s38_s10), 0 }
  0x6a   : > { %p4372_p10 = por %p4931_p6, %p54_p4  ;;  %p56_p5 = por %p55_p13, %p54_p4 }
  0x6b   : > { %s264_s16 = sand.u32 1, %s4141_s23   ;;  %s42_s17 = ssub.s32 %s4149_s25, %s4953_s10 }
  0x6c   : > { %p45_p7 = scmp.eq.s32.totalorder %s42_s17, 0  ;;  %s3297_s14 = sshll.u32 %s264_s16, 4 }
  0x6d   : > { %s3370_s18 = sshll.u32 %s4149_s25, 8  ;;  %s4933_s0 = sld [smem:[#allocation20_spill]] }
  0x6e   : > { %s4384_s19 = scalar_select %p45_p7, %s4141_s23, %s47_s20  }
  0x6f   : > { %s268_s9 = scalar_lea.vmem [#allocation3], %s3297_s14  ;;  %p4395_p11 = pnand %p3734_p3, %p56_p5 }
  0x70   : > { %s277_s12 = sshll.u32 %s268_s9, 4  ;;  %s4402_s28 = scalar_lea.hbm %s4904_s1, %s3370_s18  ;;  %s4391_s12 = int_to_ptr.vmem [resolvable:$true] %s277_s12 }
  0x71   : > { %s291_s8 = scalar_lea.vmem [#allocation6], %s3297_s14  ;;  %s4406_s15 = scalar_lea.sflag [#allocation4], %s264_s16 }
  0x72   : > { %s4404_s13 = sshll.u32 %s291_s8, 4  ;;  %p4001_p12 = pneg %p4395_p11  ;;  %s4438_s13 = int_to_ptr.vmem [resolvable:$true] %s4404_s13 }
  0x73   : > { %s4389_s11 = scalar_lea.hbm %s4933_s0, %s3370_s18  ;;  %s4004_s20 = scalar_lea.hbm %s4933_s0, 512 }
  0x74   : > { %s3999_s9 = scalar_lea.hbm %s4389_s11, 256  ;;  %p4005_p2 = scmp.lt.u32.totalorder %s4389_s11, %s4933_s0 }
  0x75   : > { %p4000_p9 = scmp.ne.s32.totalorder %s4389_s11, %s3999_s9  ;;  %p4006_p4 = scmp.lt.u32.totalorder %s4004_s20, %s3999_s9 }
  0x76   : > { %p4008_p13 = scmp.lt.u32.totalorder %s3999_s9, %s4389_s11 }
  0x77   : > { %p4002_p0 = pnand %p4001_p12, %p4000_p9  ;;  %p4007_p8 = por %p4006_p4, %p4005_p2 }
  0x79   : > { %p4003_p1 = pneg %p4002_p0  ;;  %p4009_p6 = por %p4008_p13, %p4007_p8 }
  0x7b   : > { %p4010_p3 = pnand %p4009_p6, %p4003_p1 }
  0x7d   : > { %4013 = shalt.err (!%p4010_p3)
}
  0x7e   : > { %s4014_s16 = scalar_lea.vmem %s4391_s12, 256  ;;  %s4160_s2 = smov [#allocation3]  }
  0x7f   : > { %p4015_p5 = scmp.ne.s32.totalorder %s4391_s12, %s4014_s16  ;;  %s4019_s3 = sshll.u32 %s4160_s2, 4  ;;  %s4020_s3 = int_to_ptr.vmem [resolvable:$false] %s4019_s3 }
  0x80   : > { %s4021_s14 = scalar_lea.vmem %s4020_s3, 512  ;;  %p4022_p0 = scmp.lt.s32.totalorder %s4391_s12, %s4020_s3 }
  0x81   : > { %p4017_p7 = pnand %p4015_p5, %p4001_p12  ;;  %p4023_p2 = scmp.lt.s32.totalorder %s4021_s14, %s4014_s16 }
  0x83   : > { %p4018_p9 = pneg %p4017_p7  ;;  %p4024_p4 = por %p4023_p2, %p4022_p0 }
  0x85   : > { %p4025_p8 = pnand %p4024_p4, %p4018_p9 }
  0x87   : > { %4028 = shalt.err (!%p4025_p8)
}
  0x88   : > { %s4935_s8 = smov 8   ;;  %s4936_s9 = smov 128  }
  0x89   : > { %3723 = dma.hbm_to_vmem [thread:$0]  (!%p4395_p11), %s4389_s11, 256, %s4391_s12, %s4406_s15, %s4936_s9, %s4936_s9, %s4935_s8  }
  0x8a   : > { %s287_s20 = sand.u32 1, %s4153_s26   ;;  %s4029_s18 = scalar_lea.hbm %s4402_s28, 256 }
  0x8b   : > { %s4441_s17 = scalar_lea.sflag [#allocation7], %s287_s20  ;;  %p4030_p1 = scmp.ne.s32.totalorder %s4402_s28, %s4029_s18 }
  0x8c   : > { %s4034_s3 = scalar_lea.hbm %s4904_s1, 512  ;;  %p4035_p3 = scmp.lt.u32.totalorder %s4402_s28, %s4904_s1 }
  0x8d   : > { %p4032_p13 = pnand %p4030_p1, %p4001_p12  ;;  %p4036_p5 = scmp.lt.u32.totalorder %s4034_s3, %s4029_s18 }
  0x8e   : > { %p4038_p9 = scmp.lt.u32.totalorder %s4029_s18, %s4402_s28 }
  0x8f   : > { %p4033_p6 = pneg %p4032_p13  ;;  %p4037_p7 = por %p4036_p5, %p4035_p3 }
  0x91   : > { %p4039_p0 = por %p4038_p9, %p4037_p7 }
  0x93   : > { %p4040_p2 = pnand %p4039_p0, %p4033_p6 }
  0x95   : > { %4043 = shalt.err (!%p4040_p2)
}
  0x96   : > { %s4044_s15 = scalar_lea.vmem %s4438_s13, 256  ;;  %s4161_s11 = smov [#allocation6]  }
  0x97   : > { %p4045_p4 = scmp.ne.s32.totalorder %s4438_s13, %s4044_s15  ;;  %s4049_s12 = sshll.u32 %s4161_s11, 4  ;;  %s4050_s12 = int_to_ptr.vmem [resolvable:$false] %s4049_s12 }
  0x98   : > { %s4051_s0 = scalar_lea.vmem %s4050_s12, 512  ;;  %p4052_p13 = scmp.lt.s32.totalorder %s4438_s13, %s4050_s12 }
  0x99   : > { %p4047_p8 = pnand %p4045_p4, %p4001_p12  ;;  %p4053_p3 = scmp.lt.s32.totalorder %s4051_s0, %s4044_s15 }
  0x9b   : > { %p4048_p1 = pneg %p4047_p8  ;;  %p4054_p5 = por %p4053_p3, %p4052_p13 }
  0x9d   : > { %p4055_p7 = pnand %p4054_p5, %p4048_p1 }
  0x9f   : > { %4058 = shalt.err (!%p4055_p7)
}
  0xa0   : > { %3726 = dma.hbm_to_vmem [thread:$0]  (!%p4395_p11), %s4402_s28, 256, %s4438_s13, %s4441_s17, %s4936_s9, %s4936_s9, %s4935_s8  }
  0xa1   : > { %p4937_p12 = scmp.ne.s32.totalorder %s4926_s7, 0 }
  0xa2   : > { %s4473_s20 = sand.u32 (!%p4937_p12), 1, %s4137_s22   ;;  %p4938_p6 = scmp.ne.s32.totalorder (!%p4937_p12), %s4923_s29, 0 }
  0xa3   : > { %310 = sbr.rel (%p4937_p12) target bundleno = 1681 (0x691), region = 44  ;;  %s4476_s18 = sshll.u32 (!%p4937_p12), %s4473_s20, 4 }
  0xa4   : > { %s313_s21 = scalar_lea.sflag (!%p4937_p12), [#allocation4], %s4473_s20  ;;  %s316_s16 = scalar_lea.vmem (!%p4937_p12), [#allocation3], %s4476_s18 }
  0xaa   : > { %4112 = dma.done.wait (%p4938_p6), %s313_s21, 256  }
  0xab   : > { %4114 = vsyncadd (%p4938_p6), %s313_s21, 4294967040  ;;  %s321_s7 = sand.u32 1, %s4247_s27   ;;  %s325_s28 = scalar_lea.vmem [#allocation6], %s4476_s18 }
  0xac   : > { %s322_s13 = scalar_lea.sflag [#allocation7], %s321_s7 }
  0xad   : > { %4116 = dma.done.wait (%p4938_p6), %s322_s13, 256  }
  0xae   : > { %4118 = vsyncadd (%p4938_p6), %s322_s13, 4294967040  ;;  %p4939_p11 = scmp.eq.s32.totalorder %s4247_s27, 0 }
  0xb0   : > { %4120 = dma.done.wait (%p4939_p11), [#allocation7], 1024   ;;  %p4940_p9 = pmov %p4939_p11 }
  0xb2   : > { %4122 = vsyncadd (%p4940_p9), [#allocation7], 4294966272  ;;  %p4941_p0 = pmov %p4940_p9 }
  0xb4   : > { %4124 = dma.done.wait (%p4941_p0), [#allocation10], 2048   ;;  %p4942_p2 = pmov %p4941_p0 }
  0xb5   : > { %v379_v0 = vld [vmem:[#allocation9] sm:$0xff]  ;;  %v380_v1 = vld [vmem:[#allocation9 + $0x8] sm:$0xff]  ;;  %v381_v2 = vld [vmem:[#allocation9 + $0x10] sm:$0xff]  ;;  %vm387_vm0 = vcmask 523264   ;;  %s4162_s27 = smov 112   ;;  %s4163_s29 = smov 120  }
  0xb6   : > { %4126 = vsyncadd (%p4942_p2), [#allocation10], 4294965248  ;;  %v3612_v3 = vpack.c.bf16 %v380_v1, %v379_v0  ;;  %v382_v4 = vld [vmem:[#allocation9 + $0x18] sm:$0xff]  ;;  %v383_v6 = vld [vmem:[#allocation9 + $0x20] sm:$0xff]  ;;  %vm897_vm1 = vcmask 64512   ;;  %s4164_s8 = smov 104  }
  0xb7   : > { %v3616_v5 = vpack.c.bf16 %v382_v4, %v381_v2  ;;  %v384_v7 = vld [vmem:[#allocation9 + $0x28] sm:$0xff]  ;;  %v377_v8 = vld [vmem:[%s325_s28] sm:$0xff]  ;;  %v476_v13 = vld [vmem:[#allocation8 + $0x18] sm:$0xff]  ;;  %s4165_s9 = smov 96   ;;  %s4166_s17 = smov 88   ;;  %vm1530_vm2 = vcmask 130048  }
  0xb8   : > { %3613 = vmatprep.subr.bf16.mxu0 %v3612_v3  ;;  %3475 = vmatprep.mubr.msk.f32.mxu0 %vm387_vm0, %v377_v8  ;;  %v473_v9 = vld [vmem:[#allocation8] sm:$0xff]  ;;  %v474_v10 = vld [vmem:[#allocation8 + $0x8] sm:$0xff]  ;;  %v475_v12 = vld [vmem:[#allocation8 + $0x10] sm:$0xff]  ;;  %v3620_v14 = vpack.c.bf16 %v384_v7, %v383_v6  ;;  %s4167_s2 = smov 80   ;;  %s4168_s3 = smov 72   ;;  %vm3026_vm3 = vcmask 261120  }
  0xb9   : > { %3615 = vmatpush3.bf16.msra.mxu0 %v3612_v3  ;;  %v3628_v11 = vpack.c.bf16 %v474_v10, %v473_v9  ;;  %v3632_v15 = vpack.c.bf16 %v476_v13, %v475_v12  ;;  %v477_v16 = vld [vmem:[#allocation8 + $0x20] sm:$0xff]  ;;  %v478_v17 = vld [vmem:[#allocation8 + $0x28] sm:$0xff]  ;;  %v385_v18 = vld [vmem:[#allocation9 + $0x30] sm:$0xff]  ;;  %s4169_s14 = smov 64   ;;  %s4172_s15 = smov 16   ;;  %vm3023_vm4 = vcmask 195584  }
  0xba   : > { %3617 = vmatprep.subr.bf16.mxu0 %v3616_v5  ;;  %v386_v19 = vld [vmem:[#allocation9 + $0x38] sm:$0xff]  ;;  %v471_v20 = vld [vmem:[%s316_s16] sm:$0xff]  ;;  %v3636_v21 = vpack.c.bf16 %v478_v17, %v477_v16  ;;  %s4173_s11 = smov 8   ;;  %s4174_s12 = smov 24   ;;  %vm3029_vm5 = vcmask 326656   ;;  %vm3032_vm6 = vcmask 392192  }
  0xbb   : > { %3629 = vmatprep.subr.bf16.mxu1 %v3628_v11  ;;  %3494 = vmatprep.mubr.msk.f32.mxu1 %vm387_vm0, %v471_v20  ;;  %v3624_v22 = vpack.c.bf16 %v386_v19, %v385_v18  ;;  %v479_v23 = vld [vmem:[#allocation8 + $0x30] sm:$0xff]  ;;  %v480_v24 = vld [vmem:[#allocation8 + $0x38] sm:$0xff]  ;;  %s4175_s0 = smov 32   ;;  %s4176_s21 = smov 40   ;;  %vm3035_vm7 = vcmask 457728  }
  0xbc   : > { %3631 = vmatpush3.bf16.msra.mxu1 %v3628_v11  ;;  %v3640_v25 = vpack.c.bf16 %v480_v24, %v479_v23  ;;  %v378_v26 = vld [vmem:[%s325_s28 + $0x8] sm:$0xff]  ;;  %s4178_s7 = smov 56  }
  0xbd   : > { %3619 = vmatpush3.bf16.msra.mxu0 %v3616_v5  ;;  %3633 = vmatprep.subr.bf16.mxu1 %v3632_v15  ;;  %v472_v27 = vld [vmem:[%s316_s16 + $0x8] sm:$0xff]  ;;  %s4177_s16 = smov 48  }
  0xbe   : > { %3621 = vmatprep.subr.bf16.mxu0 %v3620_v14 }
  0xc0   : > { %3635 = vmatpush3.bf16.msra.mxu1 %v3632_v15 }
  0xc1   : > { %3623 = vmatpush3.bf16.msra.mxu0 %v3620_v14  ;;  %3637 = vmatprep.subr.bf16.mxu1 %v3636_v21 }
  0xc2   : > { %3625 = vmatprep.subr.bf16.mxu0 %v3624_v22 }
  0xc4   : > { %3639 = vmatpush3.bf16.msra.mxu1 %v3636_v21 }
  0xc5   : > { %3627 = vmatpush3.bf16.msra.mxu0 %v3624_v22  ;;  %3641 = vmatprep.subr.bf16.mxu1 %v3640_v25 }
  0xc8   : > { %3476 = vmatmul.mubr.msk.f32.vlgmr.msra.gmra.mrb[0].mxu0 %vm387_vm0, %v378_v26  ;;  %3643 = vmatpush3.bf16.msra.mxu1 %v3640_v25 }
  0xcb   : > { %3495 = vmatmul.mubr.msk.f32.vlgmr.msra.gmra.mrb[0].mxu1 %vm387_vm0, %v472_v27 }
 0x19b   : > { %v4510_v28 = vpop.f32.mrb[0].mxu0 }
 0x19c   : > { %607 = vrot.lane.b32.xlu1 %v4510_v28, %s4162_s27  ;;  %601 = vrot.lane.b32.xlu0 %v4510_v28, %s4163_s29  ;;  %v4516_v29 = vpop.f32.mrb[1].mxu0 }
 0x19d   : > { %v3811_v30 = vpack.i.bf16 %v4510_v28, %v4516_v29 }
 0x19e   : > { %v3496_v31 = vpop.f32.mrb[0].mxu1 }
 0x19f   : > { %v554_v32 = vpop.f32.mrb[1].mxu1  ;;  %v4535_v34 = vmul.f32 0.35355338, %v3496_v31 }
 0x1a0   : > { %613 = vrot.lane.b32.xlu1 %v4510_v28, %s4164_s8  ;;  %619 = vrot.lane.b32.xlu0 %v4510_v28, %s4165_s9  ;;  %v563_v33 = vmul.f32 0.35355338, %v554_v32 }
 0x1a2   : > { %3499 = vmatprep.mubr.msk.f32.mxu1 %vm897_vm1, %v563_v33 }
 0x1a4   : > { %625 = vrot.lane.b32.xlu1 %v4510_v28, %s4166_s17  ;;  %631 = vrot.lane.b32.xlu0 %v4510_v28, %s4167_s2 }
 0x1a8   : > { %637 = vrot.lane.b32.xlu1 %v4510_v28, %s4168_s3  ;;  %599 = vrot.lane.b32.xlu0 %v4516_v29, %s4163_s29 }
 0x1ac   : > { %605 = vrot.lane.b32.xlu1 %v4516_v29, %s4162_s27  ;;  %611 = vrot.lane.b32.xlu0 %v4516_v29, %s4164_s8 }
 0x1b0   : > { %623 = vrot.lane.b32.xlu1 %v4516_v29, %s4166_s17  ;;  %617 = vrot.lane.b32.xlu0 %v4516_v29, %s4165_s9 }
 0x1b4   : > { %635 = vrot.lane.b32.xlu1 %v4516_v29, %s4168_s3  ;;  %629 = vrot.lane.b32.xlu0 %v4516_v29, %s4167_s2 }
 0x1b8   : > { %581 = vrot.lane.b32.xlu0 %v4535_v34, %s4165_s9  ;;  %569 = vrot.lane.b32.xlu1 %v4535_v34, %s4163_s29 }
 0x1bc   : > { %589 = vrot.lane.b32.xlu0 %v4535_v34, %s4167_s2  ;;  %573 = vrot.lane.b32.xlu1 %v4535_v34, %s4162_s27 }
 0x1c0   : > { %567 = vrot.lane.b32.xlu0 %v563_v33, %s4163_s29  ;;  %577 = vrot.lane.b32.xlu1 %v4535_v34, %s4164_s8 }
 0x1c4   : > { %571 = vrot.lane.b32.xlu0 %v563_v33, %s4162_s27  ;;  %585 = vrot.lane.b32.xlu1 %v4535_v34, %s4166_s17  ;;  %s370_s27 = scalar_lea.vmem [#allocation12], %s4476_s18  ;;  %s3137_s18 = scalar_lea.sflag [#allocation5], %s4473_s20 }
 0x1c5   : > { %s3152_s29 = sshll.u32 %s370_s27, 4  ;;  %s4846_s29 = int_to_ptr.vmem [resolvable:$true] %s3152_s29 }
 0x1c8   : > { %575 = vrot.lane.b32.xlu0 %v563_v33, %s4164_s8  ;;  %593 = vrot.lane.b32.xlu1 %v4535_v34, %s4168_s3  ;;  %s3372_s8 = sshll.u32 %s4145_s24, 8  ;;  %s4059_s24 = scalar_lea.vmem %s4846_s29, 256 }
 0x1c9   : > { %p4060_p4 = scmp.ne.s32.totalorder %s4846_s29, %s4059_s24 }
 0x1cb   : > { %p4061_p8 = pnand %p4060_p4, %p4372_p10 }
 0x1cc   : > { %579 = vrot.lane.b32.xlu0 %v563_v33, %s4165_s9  ;;  %583 = vrot.lane.b32.xlu1 %v563_v33, %s4166_s17 }
 0x1cd   : > { %p4062_p1 = pneg %p4061_p8 }
 0x1d0   : > { %587 = vrot.lane.b32.xlu0 %v563_v33, %s4167_s2  ;;  %591 = vrot.lane.b32.xlu1 %v563_v33, %s4168_s3  ;;  %s4851_s2 = scalar_lea.hbm %s4909_s6, %s3372_s8  ;;  %s4179_s3 = smov [#allocation12]  }
 0x1ee   : > { %641 = vxpose.xlu0.b32.start [1/2] (short) (narrow) %v4516_v29, 8 }
 0x1f2   : > { %642 = vxpose.xlu0.b32.end [2/2] (short) (narrow) %v4510_v28, 8 }
 0x20e   : > { %v608_v35 = vpop.permute.xlu1 %607  ;;  %v602_v36 = vpop.permute.xlu0 %601 }
 0x212   : > { %v614_v37 = vpop.permute.xlu1 %613  ;;  %v620_v38 = vpop.permute.xlu0 %619 }
 0x216   : > { %v626_v39 = vpop.permute.xlu1 %625  ;;  %v4550_v40 = vpop.permute.xlu0 %631 }
 0x21a   : > { %v4552_v41 = vpop.permute.xlu1 %637  ;;  %v600_v42 = vpop.permute.xlu0 %599 }
 0x21b   : > { %v3816_v43 = vpack.i.bf16 %v602_v36, %v600_v42  ;;  %673 = vxpose.xlu1.b32.start [1/2] (short) (narrow) %v600_v42, 8 }
 0x21e   : > { %v606_v44 = vpop.permute.xlu1 %605  ;;  %v612_v45 = vpop.permute.xlu0 %611 }
 0x21f   : > { %705 = vxpose.xlu0.b32.start [1/2] (short) (narrow) %v606_v44, 8  ;;  %674 = vxpose.xlu1.b32.end [2/2] (short) (narrow) %v602_v36, 8  ;;  %v3821_v59 = vpack.i.bf16 %v608_v35, %v606_v44  ;;  %v3826_v60 = vpack.i.bf16 %v614_v37, %v612_v45 }
 0x222   : > { %v624_v46 = vpop.permute.xlu1 %623  ;;  %v618_v47 = vpop.permute.xlu0 %617 }
 0x223   : > { %v3831_v48 = vpack.i.bf16 %v620_v38, %v618_v47  ;;  %706 = vxpose.xlu0.b32.end [2/2] (short) (narrow) %v608_v35, 8  ;;  %769 = vxpose.xlu1.b32.start [1/2] (short) (narrow) %v618_v47, 8  ;;  %v3836_v61 = vpack.i.bf16 %v626_v39, %v624_v46 }
 0x226   : > { %v4554_v49 = vpop.permute.xlu1 %635  ;;  %v4556_v50 = vpop.permute.xlu0 %629 }
 0x227   : > { %v3846_v51 = vpack.i.bf16 %v4552_v41, %v4554_v49  ;;  %v3841_v52 = vpack.i.bf16 %v4550_v40, %v4556_v50  ;;  %737 = vxpose.xlu0.b32.start [1/2] (short) (narrow) %v612_v45, 8  ;;  %770 = vxpose.xlu1.b32.end [2/2] (short) (narrow) %v620_v38, 8 }
 0x22a   : > { %v582_v53 = vpop.permute.xlu0 %581  ;;  %v570_v0 = vpop.permute.xlu1 %569 }
 0x22b   : > { %738 = vxpose.xlu0.b32.end [2/2] (short) (narrow) %v614_v37, 8  ;;  %833 = vxpose.xlu1.b32.start [1/2] (short) (narrow) %v4556_v50, 8 }
 0x22e   : > { %v590_v54 = vpop.permute.xlu0 %589  ;;  %v574_v1 = vpop.permute.xlu1 %573 }
 0x22f   : > { %801 = vxpose.xlu0.b32.start [1/2] (short) (narrow) %v624_v46, 8  ;;  %834 = vxpose.xlu1.b32.end [2/2] (short) (narrow) %v4550_v40, 8 }
 0x232   : > { %v568_v55 = vpop.permute.xlu0 %567  ;;  %v578_v2 = vpop.permute.xlu1 %577 }
 0x233   : > { %802 = vxpose.xlu0.b32.end [2/2] (short) (narrow) %v626_v39, 8 }
 0x236   : > { %v572_v56 = vpop.permute.xlu0 %571  ;;  %v586_v3 = vpop.permute.xlu1 %585 }
 0x237   : > { %865 = vxpose.xlu0.b32.start [1/2] (short) (narrow) %v4554_v49, 8 }
 0x23a   : > { %v576_v57 = vpop.permute.xlu0 %575  ;;  %v594_v4 = vpop.permute.xlu1 %593 }
 0x23b   : > { %866 = vxpose.xlu0.b32.end [2/2] (short) (narrow) %v4552_v41, 8 }
 0x23e   : > { %v580_v58 = vpop.permute.xlu0 %579  ;;  %v584_v5 = vpop.permute.xlu1 %583 }
 0x23f   : > { %3519 = vmatprep.mubr.msk.f32.mxu0 %vm897_vm1, %v580_v58 }
 0x242   : > { %v588_v62 = vpop.permute.xlu0 %587  ;;  %v592_v6 = vpop.permute.xlu1 %591 }
 0x24d   : > { %3812 = vrot.lane.b32.xlu1 %v3811_v30, %s4169_s14 }
 0x251   : > { %3822 = vrot.lane.b32.xlu1 %v3821_v59, %s4169_s14 }
 0x255   : > { %3827 = vrot.lane.b32.xlu1 %v3826_v60, %s4169_s14 }
 0x259   : > { %3837 = vrot.lane.b32.xlu1 %v3836_v61, %s4169_s14 }
 0x264   : > { %3817 = vrot.lane.b32.xlu0 %v3816_v43, %s4169_s14 }
 0x268   : > { %3832 = vrot.lane.b32.xlu0 %v3831_v48, %s4169_s14 }
 0x26e   : > { %v657_v63 = vpop.trf.xlu0 }
 0x26f   : > { %3497 = vmatprep.subr.mxu1 %v657_v63 }
 0x270   : > { %3498 = vmatpush3.msra.mxu1 %v657_v63 }
 0x271   : > { %3500 = vmatmul.mubr.msk.f32.vlgmr.msra.gmra.mrb[2].mxu1 %vm897_vm1, %v4535_v34 }
 0x272   : > { %3504 = vmatprep.mubr.msk.f32.mxu1 %vm897_vm1, %v568_v55 }
 0x29b   : > { %v689_v7 = vpop.trf.xlu1 }
 0x29c   : > { %3502 = vmatprep.subr.mxu1 %v689_v7 }
 0x29d   : > { %3503 = vmatpush3.msra.mxu1 %v689_v7 }
 0x29e   : > { %3505 = vmatmul.mubr.msk.f32.vlgmr.msra.gmra.mrb[4].mxu1 %vm897_vm1, %v570_v0 }
 0x29f   : > { %3509 = vmatprep.mubr.msk.f32.mxu1 %vm897_vm1, %v572_v56  ;;  %v721_v8 = vpop.trf.xlu0 }
 0x2a0   : > { %3507 = vmatprep.subr.mxu1 %v721_v8 }
 0x2a1   : > { %3508 = vmatpush3.msra.mxu1 %v721_v8 }
 0x2a2   : > { %3510 = vmatmul.mubr.msk.f32.vlgmr.msra.gmra.mrb[6].mxu1 %vm897_vm1, %v574_v1 }
 0x2a3   : > { %v785_v9 = vpop.trf.xlu1  ;;  %3514 = vmatprep.mubr.msk.f32.mxu1 %vm897_vm1, %v576_v57 }
 0x2a4   : > { %3517 = vmatprep.subr.mxu0 %v785_v9 }
 0x2a5   : > { %3518 = vmatpush3.msra.mxu0 %v785_v9 }
 0x2a6   : > { %3520 = vmatmul.mubr.msk.f32.vlgmr.msra.gmra.mrb[2].mxu0 %vm897_vm1, %v582_v53 }
 0x2a7   : > { %3529 = vmatprep.mubr.msk.f32.mxu0 %vm897_vm1, %v588_v62  ;;  %v753_v10 = vpop.trf.xlu0 }
 0x2a8   : > { %3512 = vmatprep.subr.mxu1 %v753_v10 }
 0x2a9   : > { %3513 = vmatpush3.msra.mxu1 %v753_v10 }
 0x2aa   : > { %3515 = vmatmul.mubr.msk.f32.vlgmr.msra.gmra.mrb[8].mxu1 %vm897_vm1, %v578_v2 }
 0x2ab   : > { %v849_v11 = vpop.trf.xlu1  ;;  %3524 = vmatprep.mubr.msk.f32.mxu1 %vm897_vm1, %v584_v5 }
 0x2ac   : > { %3527 = vmatprep.subr.mxu0 %v849_v11 }
 0x2ad   : > { %3528 = vmatpush3.msra.mxu0 %v849_v11 }
 0x2ae   : > { %3530 = vmatmul.mubr.msk.f32.vlgmr.msra.gmra.mrb[4].mxu0 %vm897_vm1, %v590_v54 }
 0x2af   : > { %v817_v12 = vpop.trf.xlu0 }
 0x2b0   : > { %3522 = vmatprep.subr.mxu1 %v817_v12 }
 0x2b1   : > { %3523 = vmatpush3.msra.mxu1 %v817_v12 }
 0x2b2   : > { %3525 = vmatmul.mubr.msk.f32.vlgmr.msra.gmra.mrb[10].mxu1 %vm897_vm1, %v586_v3 }
 0x2b3   : > { %3534 = vmatprep.mubr.msk.f32.mxu1 %vm897_vm1, %v592_v6 }
 0x2b7   : > { %v881_v13 = vpop.trf.xlu0 }
 0x2b8   : > { %3532 = vmatprep.subr.mxu1 %v881_v13 }
 0x2b9   : > { %3533 = vmatpush3.msra.mxu1 %v881_v13 }
 0x2ba   : > { %3535 = vmatmul.mubr.msk.f32.vlgmr.msra.gmra.mrb[12].mxu1 %vm897_vm1, %v594_v4 }
 0x2bf   : > { %v3813_v14 = vpop.permute.xlu1 %3812 }
 0x2c0   : > { %v3815_v15 = vunpack.i.h.bf16 %v3813_v14  ;;  %v3814_v16 = vunpack.i.l.bf16 %v3813_v14 }
 0x2c2   : > { %v3644_v17 = vpack.c.bf16 %v3815_v15, %v3814_v16 }
 0x2c3   : > { %v3823_v18 = vpop.permute.xlu1 %3822 }
 0x2c4   : > { %v3825_v19 = vunpack.i.h.bf16 %v3823_v18  ;;  %v3824_v20 = vunpack.i.l.bf16 %v3823_v18  ;;  %3645 = vmatprep.subr.bf16.mxu0 %v3644_v17 }
 0x2c5   : > { %3647 = vmatpush3.bf16.msra.mxu0 %v3644_v17 }
 0x2c6   : > { %v4591_v21 = vpack.c.bf16 %v3825_v19, %v3824_v20 }
 0x2c7   : > { %v3828_v22 = vpop.permute.xlu1 %3827 }
 0x2c8   : > { %3653 = vmatprep.subr.bf16.mxu0 %v4591_v21  ;;  %v3830_v24 = vunpack.i.h.bf16 %v3828_v22  ;;  %v3829_v25 = vunpack.i.l.bf16 %v3828_v22 }
 0x2ca   : > { %v4594_v29 = vpack.c.bf16 %v3830_v24, %v3829_v25 }
 0x2cb   : > { %v3838_v4 = vpop.permute.xlu1 %3837 }
 0x2d6   : > { %v3818_v23 = vpop.permute.xlu0 %3817 }
 0x2d7   : > { %v3820_v26 = vunpack.i.h.bf16 %v3818_v23  ;;  %v3819_v27 = vunpack.i.l.bf16 %v3818_v23 }
 0x2d9   : > { %v3648_v28 = vpack.c.bf16 %v3820_v26, %v3819_v27  ;;  %v3840_v26 = vunpack.i.h.bf16 %v3838_v4  ;;  %v3839_v27 = vunpack.i.l.bf16 %v3838_v4 }
 0x2da   : > { %v3833_v11 = vpop.permute.xlu0 %3832 }
 0x2db   : > { %3649 = vmatprep.subr.bf16.mxu1 %v3648_v28  ;;  %v3835_v41 = vunpack.i.h.bf16 %v3833_v11  ;;  %v3834_v49 = vunpack.i.l.bf16 %v3833_v11 }
 0x2dc   : > { %3651 = vmatpush3.bf16.msra.mxu1 %v3648_v28 }
 0x2dd   : > { %3657 = vmatprep.subr.bf16.mxu1 %v4594_v29  ;;  %v4666_v50 = vpack.c.bf16 %v3835_v41, %v3834_v49 }
 0x344   : > { %v3501_v30 = vpop.f32.mrb[2].mxu1 }
 0x345   : > { %v968_v31 = vpop.f32.mrb[3].mxu1  ;;  %v1534_v32 = vsel %vm1530_vm2, %v3501_v30, -inf }
 0x346   : > { %1535 = vmax.xlane.f32.xlu1 %v1534_v32  ;;  %v1531_v33 = vsel %vm1530_vm2, %v968_v31, -inf }
 0x34a   : > { %1532 = vmax.xlane.f32.xlu1 %v1531_v33 }
 0x371   : > { %v4599_v34 = vpop.f32.mrb[4].mxu1 }
 0x372   : > { %v4601_v35 = vpop.f32.mrb[5].mxu1  ;;  %v1540_v36 = vsel %vm1530_vm2, %v4599_v34, -inf }
 0x373   : > { %1541 = vmax.xlane.f32.xlu1 %v1540_v36  ;;  %v1537_v37 = vsel %vm1530_vm2, %v4601_v35, -inf }
 0x374   : > { %1538 = vmax.xlane.f32.xlu0 %v1537_v37 }
 0x375   : > { %v4607_v38 = vpop.f32.mrb[6].mxu1 }
 0x376   : > { %v4609_v39 = vpop.f32.mrb[7].mxu1  ;;  %v1546_v55 = vsel %vm1530_vm2, %v4607_v38, -inf }
 0x377   : > { %v1543_v61 = vsel %vm1530_vm2, %v4609_v39, -inf }
 0x379   : > { %v4611_v42 = vpop.f32.mrb[2].mxu0 }
 0x37a   : > { %v4613_v43 = vpop.f32.mrb[3].mxu0  ;;  %v1558_v44 = vsel %vm1530_vm2, %v4611_v42, -inf }
 0x37b   : > { %1559 = vmax.xlane.f32.xlu1 %v1558_v44  ;;  %v1555_v47 = vsel %vm1530_vm2, %v4613_v43, -inf }
 0x37d   : > { %v4617_v45 = vpop.f32.mrb[8].mxu1 }
 0x37e   : > { %v4619_v46 = vpop.f32.mrb[9].mxu1  ;;  %v1552_v48 = vsel %vm1530_vm2, %v4617_v45, -inf }
 0x37f   : > { %1556 = vmax.xlane.f32.xlu1 %v1555_v47  ;;  %1553 = vmax.xlane.f32.xlu0 %v1552_v48  ;;  %v1549_v56 = vsel %vm1530_vm2, %v4619_v46, -inf }
 0x381   : > { %v4625_v53 = vpop.f32.mrb[4].mxu0 }
 0x382   : > { %v4627_v54 = vpop.f32.mrb[5].mxu0  ;;  %v1570_v59 = vsel %vm1530_vm2, %v4625_v53, -inf }
 0x383   : > { %1547 = vmax.xlane.f32.xlu1 %v1546_v55  ;;  %1550 = vmax.xlane.f32.xlu0 %v1549_v56  ;;  %v1567_v1 = vsel %vm1530_vm2, %v4627_v54, -inf }
 0x385   : > { %v4633_v57 = vpop.f32.mrb[10].mxu1 }
 0x386   : > { %v4635_v58 = vpop.f32.mrb[11].mxu1  ;;  %v1564_v60 = vsel %vm1530_vm2, %v4633_v57, -inf }
 0x387   : > { %1571 = vmax.xlane.f32.xlu1 %v1570_v59  ;;  %1565 = vmax.xlane.f32.xlu0 %v1564_v60  ;;  %v1561_v62 = vsel %vm1530_vm2, %v4635_v58, -inf }
 0x38b   : > { %1544 = vmax.xlane.f32.xlu1 %v1543_v61  ;;  %1562 = vmax.xlane.f32.xlu0 %v1561_v62 }
 0x38d   : > { %v4645_v63 = vpop.f32.mrb[12].mxu1 }
 0x38e   : > { %v4647_v0 = vpop.f32.mrb[13].mxu1  ;;  %v1576_v2 = vsel %vm1530_vm2, %v4645_v63, -inf }
 0x38f   : > { %1568 = vmax.xlane.f32.xlu1 %v1567_v1  ;;  %1577 = vmax.xlane.f32.xlu0 %v1576_v2  ;;  %v1573_v3 = vsel %vm1530_vm2, %v4647_v0, -inf }
 0x393   : > { %1574 = vmax.xlane.f32.xlu0 %v1573_v3 }
 0x3a0   : > { %3847 = vrot.lane.b32.xlu1 %v3846_v51, %s4169_s14 }
 0x3a9   : > { %3842 = vrot.lane.b32.xlu0 %v3841_v52, %s4169_s14  ;;  %s4063_s14 = sshll.u32 %s4179_s3, 4  ;;  %s4064_s14 = int_to_ptr.vmem [resolvable:$false] %s4063_s14 }
 0x3aa   : > { %p4066_p13 = scmp.lt.s32.totalorder %s4846_s29, %s4064_s14 }
 0x3d3   : > { %v1536_v5 = vpop.xlane.xlu1 %1535 }
 0x3d4   : > { %v1580_v6 = vsub.f32 %v3501_v30, %v1536_v5 }
 0x3d6   : > { %v1597_v7 = vmul.f32 1.442695, %v1580_v6 }
 0x3d7   : > { %v1533_v8 = vpop.xlane.xlu1 %1532 }
 0x3d8   : > { %3851 = vpow2.f32 %v1597_v7  ;;  %v1579_v9 = vsub.f32 %v968_v31, %v1533_v8 }
 0x3da   : > { %v1595_v10 = vmul.f32 1.442695, %v1579_v9 }
 0x3dc   : > { %3853 = vpow2.f32 %v1595_v10 }
 0x3e2   : > { %v3852_v12 = vpop.eup %3851 }
 0x3e3   : > { %v1630_v13 = vsel %vm1530_vm2, %v3852_v12, 0.0 }
 0x3e4   : > { %1631 = vadd.xlane.f32.xlu1 %v1630_v13 }
 0x3e6   : > { %v3854_v51 = vpop.eup %3853 }
 0x3e7   : > { %3541 = vmatprep.mubr.msk.f32.mxu0 %vm1530_vm2, %v3854_v51  ;;  %v1627_v40 = vsel %vm1530_vm2, %v3854_v51, 0.0 }
 0x3e8   : > { %3542 = vmatmul.mubr.msk.f32.vlgmr.msra.gmra.mrb[6].mxu0 %vm1530_vm2, %v3852_v12  ;;  %1628 = vadd.xlane.f32.xlu0 %v1627_v40 }
 0x3e9   : > { %3655 = vmatpush3.bf16.msra.mxu0 %v4591_v21 }
 0x3ea   : > { %3661 = vmatprep.subr.bf16.mxu0 %v4666_v50 }
 0x400   : > { %v1542_v52 = vpop.xlane.xlu1 %1541 }
 0x401   : > { %v1582_v14 = vsub.f32 %v4599_v34, %v1542_v52  ;;  %v1539_v15 = vpop.xlane.xlu0 %1538 }
 0x402   : > { %v1581_v16 = vsub.f32 %v4601_v35, %v1539_v15 }
 0x403   : > { %v1601_v17 = vmul.f32 1.442695, %v1582_v14 }
 0x404   : > { %v1599_v18 = vmul.f32 1.442695, %v1581_v16 }
 0x405   : > { %3855 = vpow2.f32 %v1601_v17 }
 0x406   : > { %3857 = vpow2.f32 %v1599_v18 }
 0x408   : > { %v1560_v19 = vpop.xlane.xlu1 %1559 }
 0x409   : > { %v1588_v20 = vsub.f32 %v4611_v42, %v1560_v19  ;;  %v3664_v42 = vpack.c.bf16 %v3840_v26, %v3839_v27 }
 0x40b   : > { %v1613_v22 = vmul.f32 1.442695, %v1588_v20 }
 0x40c   : > { %v1557_v23 = vpop.xlane.xlu1 %1556  ;;  %v1554_v24 = vpop.xlane.xlu0 %1553 }
 0x40d   : > { %3859 = vpow2.f32 %v1613_v22  ;;  %v1587_v21 = vsub.f32 %v4613_v43, %v1557_v23  ;;  %v1586_v25 = vsub.f32 %v4617_v45, %v1554_v24 }
 0x40f   : > { %v3856_v28 = vpop.eup %3855  ;;  %v1611_v30 = vmul.f32 1.442695, %v1587_v21  ;;  %v1609_v35 = vmul.f32 1.442695, %v1586_v25 }
 0x410   : > { %v3858_v31 = vpop.eup %3857  ;;  %v1548_v32 = vpop.xlane.xlu1 %1547  ;;  %v1636_v34 = vsel %vm1530_vm2, %v3856_v28, 0.0 }
 0x411   : > { %v1551_v33 = vpop.xlane.xlu0 %1550  ;;  %v1584_v36 = vsub.f32 %v4607_v38, %v1548_v32  ;;  %1637 = vadd.xlane.f32.xlu0 %v1636_v34  ;;  %3548 = vmatprep.mubr.msk.f32.mxu1 %vm1530_vm2, %v3858_v31  ;;  %3861 = vpow2.f32 %v1611_v30  ;;  %v1633_v4 = vsel %vm1530_vm2, %v3858_v31, 0.0 }
 0x412   : > { %v1585_v37 = vsub.f32 %v4619_v46, %v1551_v33  ;;  %3549 = vmatmul.mubr.msk.f32.vlgmr.msra.gmra.mrb[14].mxu1 %vm1530_vm2, %v3856_v28  ;;  %3863 = vpow2.f32 %v1609_v35 }
 0x413   : > { %v1605_v43 = vmul.f32 1.442695, %v1584_v36  ;;  %3659 = vmatpush3.bf16.msra.mxu1 %v4594_v29 }
 0x414   : > { %v1607_v44 = vmul.f32 1.442695, %v1585_v37  ;;  %3665 = vmatprep.subr.bf16.mxu1 %v3664_v42  ;;  %v1572_v45 = vpop.xlane.xlu1 %1571 }
 0x415   : > { %v1566_v47 = vpop.xlane.xlu0 %1565  ;;  %v1592_v29 = vsub.f32 %v4625_v53, %v1572_v45 }
 0x416   : > { %3865 = vpow2.f32 %v1607_v44  ;;  %v1590_v38 = vsub.f32 %v4633_v57, %v1566_v47 }
 0x417   : > { %v4682_v48 = vpop.eup %3859  ;;  %3867 = vpow2.f32 %v1605_v43 }
 0x418   : > { %v1545_v46 = vpop.xlane.xlu1 %1544  ;;  %v1654_v56 = vsel %vm1530_vm2, %v4682_v48, 0.0  ;;  %v1617_v1 = vmul.f32 1.442695, %v1590_v38 }
 0x419   : > { %v1563_v55 = vpop.xlane.xlu0 %1562  ;;  %v1583_v59 = vsub.f32 %v4609_v39, %v1545_v46  ;;  %1655 = vadd.xlane.f32.xlu1 %v1654_v56  ;;  %v1621_v39 = vmul.f32 1.442695, %v1592_v29  ;;  %v4170_v56 = vmov 1983009808  }
 0x41a   : > { %v1589_v60 = vsub.f32 %v4635_v58, %v1563_v55 }
 0x41b   : > { %v1603_v61 = vmul.f32 1.442695, %v1583_v59  ;;  %v3862_v57 = vpop.eup %3861  ;;  %v2422_v59 = vunpack.c.l.s4 %v4170_v56 }
 0x41c   : > { %v1615_v62 = vmul.f32 1.442695, %v1589_v60  ;;  %v1569_v2 = vpop.xlane.xlu1 %1568  ;;  %v3864_v6 = vpop.eup %3863  ;;  %v1651_v10 = vsel %vm1530_vm2, %v3862_v57, 0.0 }
 0x41d   : > { %v1578_v3 = vpop.xlane.xlu0 %1577  ;;  %3869 = vpow2.f32 %v1603_v61  ;;  %v1591_v5 = vsub.f32 %v4627_v54, %v1569_v2  ;;  %1634 = vadd.xlane.f32.xlu1 %v1633_v4  ;;  %v1648_v23 = vsel %vm1530_vm2, %v3864_v6, 0.0  ;;  %v2424_v61 = vlaneseq }
 0x41e   : > { %3871 = vpow2.f32 %v1615_v62  ;;  %v1594_v58 = vsub.f32 %v4645_v63, %v1578_v3  ;;  %v2423_v4 = vunpack.c.0.s8 %v2422_v59 }
 0x41f   : > { %v1619_v7 = vmul.f32 1.442695, %v1591_v5  ;;  %3873 = vpow2.f32 %v1617_v1 }
 0x420   : > { %v3866_v8 = vpop.eup %3865  ;;  %v3848_v53 = vpop.permute.xlu1 %3847  ;;  %v1625_v54 = vmul.f32 1.442695, %v1594_v58 }
 0x421   : > { %v1575_v9 = vpop.xlane.xlu0 %1574  ;;  %v3868_v11 = vpop.eup %3867  ;;  %3875 = vpow2.f32 %v1619_v7  ;;  %v3850_v12 = vunpack.i.h.bf16 %v3848_v53  ;;  %v3849_v13 = vunpack.i.l.bf16 %v3848_v53  ;;  %3562 = vmatprep.mubr.msk.f32.mxu1 %vm1530_vm2, %v3866_v8  ;;  %1652 = vadd.xlane.f32.xlu1 %v1651_v10  ;;  %v1645_v25 = vsel %vm1530_vm2, %v3866_v8, 0.0 }
 0x422   : > { %v1593_v41 = vsub.f32 %v4647_v0, %v1575_v9  ;;  %3563 = vmatmul.mubr.msk.f32.vlgmr.msra.gmra.mrb[16].mxu1 %vm1530_vm2, %v3864_v6  ;;  %3877 = vpow2.f32 %v1621_v39  ;;  %v1642_v40 = vsel %vm1530_vm2, %v3868_v11, 0.0  ;;  %v4171_v7 = vmov 1934713408  }
 0x423   : > { %v3672_v63 = vpack.c.bf16 %v3850_v12, %v3849_v13  ;;  %3667 = vmatpush3.bf16.msra.mxu1 %v3664_v42  ;;  %v2486_v58 = vunpack.c.l.s4 %v4171_v7  ;;  %v2425_v53 = vshrl.u32 %v2424_v61, 7 }
 0x424   : > { %v1623_v49 = vmul.f32 1.442695, %v1593_v41 }
 0x425   : > { %v3843_v51 = vpop.permute.xlu0 %3842  ;;  %1643 = vadd.xlane.f32.xlu1 %v1642_v40  ;;  %3673 = vmatprep.subr.bf16.mxu1 %v3672_v63  ;;  %v4721_v40 = vsub.s32 %v2423_v4, %v2425_v53 }
 0x426   : > { %3879 = vpow2.f32 %v1623_v49  ;;  %v3845_v52 = vunpack.i.h.bf16 %v3843_v51  ;;  %v3844_v14 = vunpack.i.l.bf16 %v3843_v51 }
 0x427   : > { %v3870_v15 = vpop.eup %3869  ;;  %3881 = vpow2.f32 %v1625_v54 }
 0x428   : > { %v3872_v0 = vpop.eup %3871  ;;  %v3668_v16 = vpack.c.bf16 %v3845_v52, %v3844_v14  ;;  %3555 = vmatprep.mubr.msk.f32.mxu0 %vm1530_vm2, %v3870_v15  ;;  %v1639_v17 = vsel %vm1530_vm2, %v3870_v15, 0.0 }
 0x429   : > { %3576 = vmatprep.mubr.msk.f32.mxu1 %vm1530_vm2, %v3872_v0  ;;  %3556 = vmatmul.mubr.msk.f32.vlgmr.msra.gmra.mrb[8].mxu0 %vm1530_vm2, %v3868_v11  ;;  %v3874_v18 = vpop.eup %3873  ;;  %v1657_v27 = vsel %vm1530_vm2, %v3872_v0, 0.0 }
 0x42a   : > { %1640 = vadd.xlane.f32.xlu0 %v1639_v17  ;;  %3663 = vmatpush3.bf16.msra.mxu0 %v4666_v50  ;;  %v1660_v26 = vsel %vm1530_vm2, %v3874_v18, 0.0 }
 0x42b   : > { %v3876_v19 = vpop.eup %3875  ;;  %3577 = vmatmul.mubr.msk.f32.vlgmr.msra.gmra.mrb[18].mxu1 %vm1530_vm2, %v3874_v18  ;;  %3569 = vmatprep.mubr.msk.f32.mxu0 %vm1530_vm2, %v3862_v57 }
 0x42c   : > { %3675 = vmatpush3.bf16.msra.mxu1 %v3672_v63  ;;  %3669 = vmatprep.subr.bf16.mxu0 %v3668_v16  ;;  %v1663_v20 = vsel %vm1530_vm2, %v3876_v19, 0.0  ;;  %v3878_v22 = vpop.eup %3877  ;;  %v2487_v63 = vunpack.c.0.s8 %v2486_v58 }
 0x42d   : > { %1664 = vadd.xlane.f32.xlu1 %v1663_v20  ;;  %3570 = vmatmul.mubr.msk.f32.vlgmr.msra.gmra.mrb[10].mxu0 %vm1530_vm2, %v4682_v48  ;;  %v1666_v50 = vsel %vm1530_vm2, %v3878_v22, 0.0 }
 0x42e   : > { %1649 = vadd.xlane.f32.xlu0 %v1648_v23  ;;  %3671 = vmatpush3.bf16.msra.mxu0 %v3668_v16  ;;  %v4724_v20 = vsub.s32 %v2487_v63, %v2425_v53 }
 0x42f   : > { %3583 = vmatprep.mubr.msk.f32.mxu0 %vm1530_vm2, %v3876_v19 }
 0x430   : > { %v3880_v24 = vpop.eup %3879 }
 0x431   : > { %3590 = vmatprep.mubr.msk.f32.mxu1 %vm1530_vm2, %v3880_v24  ;;  %v3882_v21 = vpop.eup %3881  ;;  %1667 = vadd.xlane.f32.xlu1 %v1666_v50  ;;  %v1669_v28 = vsel %vm1530_vm2, %v3880_v24, 0.0 }
 0x432   : > { %3584 = vmatmul.mubr.msk.f32.vlgmr.msra.gmra.mrb[12].mxu0 %vm1530_vm2, %v3878_v22  ;;  %1646 = vadd.xlane.f32.xlu0 %v1645_v25  ;;  %v1672_v30 = vsel %vm1530_vm2, %v3882_v21, 0.0 }
 0x433   : > { %3591 = vmatmul.mubr.msk.f32.vlgmr.msra.gmra.mrb[20].mxu1 %vm1530_vm2, %v3882_v21 }
 0x436   : > { %1661 = vadd.xlane.f32.xlu0 %v1660_v26 }
 0x43a   : > { %1658 = vadd.xlane.f32.xlu0 %v1657_v27 }
 0x43e   : > { %1670 = vadd.xlane.f32.xlu0 %v1669_v28 }
 0x442   : > { %1673 = vadd.xlane.f32.xlu0 %v1672_v30 }
 0x471   : > { %v1632_v36 = vpop.xlane.xlu1 %1631 }
 0x475   : > { %v1629_v33 = vpop.xlane.xlu0 %1628 }
 0x49e   : > { %v1638_v34 = vpop.xlane.xlu0 %1637 }
 0x49f   : > { %3883 = vrcp.f32 %v1638_v34 }
 0x4a6   : > { %v1656_v37 = vpop.xlane.xlu1 %1655 }
 0x4a9   : > { %v3884_v60 = vpop.eup %3883 }
 0x4aa   : > { %v1635_v43 = vpop.xlane.xlu1 %1634 }
 0x4ab   : > { %3885 = vrcp.f32 %v1635_v43 }
 0x4ae   : > { %v1653_v48 = vpop.xlane.xlu1 %1652 }
 0x4b2   : > { %v1644_v46 = vpop.xlane.xlu1 %1643 }
 0x4b5   : > { %v3886_v62 = vpop.eup %3885 }
 0x4b7   : > { %v1641_v35 = vpop.xlane.xlu0 %1640 }
 0x4ba   : > { %v1665_v29 = vpop.xlane.xlu1 %1664 }
 0x4bb   : > { %v3543_v31 = vpop.f32.mrb[6].mxu0  ;;  %v1650_v42 = vpop.xlane.xlu0 %1649 }
 0x4bc   : > { %v4719_v32 = vpop.f32.mrb[7].mxu0  ;;  %3887 = vrcp.f32 %v1650_v42 }
 0x4be   : > { %v1668_v12 = vpop.xlane.xlu1 %1667 }
 0x4bf   : > { %v1647_v44 = vpop.xlane.xlu0 %1646 }
 0x4c0   : > { %3889 = vrcp.f32 %v1647_v44 }
 0x4c1   : > { %3891 = vrcp.f32 %v1632_v36 }
 0x4c2   : > { %3893 = vrcp.f32 %v1629_v33 }
 0x4c3   : > { %v1662_v38 = vpop.xlane.xlu0 %1661  ;;  %3895 = vrcp.f32 %v1644_v46 }
 0x4c4   : > { %3897 = vrcp.f32 %v1641_v35 }
 0x4c5   : > { %3899 = vrcp.f32 %v1656_v37 }
 0x4c6   : > { %v3888_v1 = vpop.eup %3887  ;;  %3901 = vrcp.f32 %v1662_v38 }
 0x4c7   : > { %v1659_v55 = vpop.xlane.xlu0 %1658 }
 0x4c8   : > { %3903 = vrcp.f32 %v1659_v55 }
 0x4c9   : > { %3905 = vrcp.f32 %v1653_v48 }
 0x4ca   : > { %v3890_v57 = vpop.eup %3889  ;;  %3907 = vrcp.f32 %v1665_v29 }
 0x4cb   : > { %v1671_v2 = vpop.xlane.xlu0 %1670  ;;  %v3892_v54 = vpop.eup %3891  ;;  %3909 = vrcp.f32 %v1668_v12 }
 0x4cc   : > { %v3894_v49 = vpop.eup %3893  ;;  %v2404_v0 = vmul.f32 %v3892_v54, %v3543_v31  ;;  %3911 = vrcp.f32 %v1671_v2 }
 0x4cd   : > { %v3896_v52 = vpop.eup %3895  ;;  %v2403_v19 = vmul.f32 %v3894_v49, %v4719_v32 }
 0x4ce   : > { %v3898_v15 = vpop.eup %3897 }
 0x4cf   : > { %v1674_v51 = vpop.xlane.xlu0 %1673  ;;  %v3900_v18 = vpop.eup %3899 }
 0x4d0   : > { %3913 = vrcp.f32 %v1674_v51  ;;  %v3902_v24 = vpop.eup %3901 }
 0x4d2   : > { %v3904_v28 = vpop.eup %3903 }
 0x4d3   : > { %v3906_v35 = vpop.eup %3905 }
 0x4d4   : > { %v3908_v2 = vpop.eup %3907 }
 0x4d5   : > { %v3910_v7 = vpop.eup %3909 }
 0x4e5   : > { %v3550_v45 = vpop.f32.mrb[14].mxu1 }
 0x4e6   : > { %v1840_v47 = vpop.f32.mrb[15].mxu1  ;;  %v2406_v5 = vmul.f32 %v3884_v60, %v3550_v45 }
 0x4e7   : > { %v2405_v8 = vmul.f32 %v3886_v62, %v1840_v47 }
 0x4f5   : > { %v3564_v3 = vpop.f32.mrb[16].mxu1 }
 0x4f6   : > { %v2410_v6 = vmul.f32 %v3888_v1, %v3564_v3  ;;  %v2014_v39 = vpop.f32.mrb[17].mxu1 }
 0x4f7   : > { %v2409_v9 = vmul.f32 %v3890_v57, %v2014_v39 }
 0x4f8   : > { %v2571_v10 = vcombine.low %v2406_v5, %v2410_v6  ;;  %v2572_v11 = vcombine.high %v2406_v5, %v2410_v6 }
 0x4f9   : > { %v2435_v13 = vcombine.low %v2405_v8, %v2409_v9  ;;  %v2436_v41 = vcombine.high %v2405_v8, %v2409_v9 }
 0x4fa   : > { %v2579_v50 = vrot.slane %v2571_v10, %v4721_v40  ;;  %v2586_v21 = vrot.slane %v2572_v11, %v4721_v40  ;;  %v3912_v11 = vpop.eup %3911 }
 0x4fb   : > { %v2443_v30 = vrot.slane %v2435_v13, %v4721_v40  ;;  %v2450_v31 = vrot.slane %v2436_v41, %v4721_v40  ;;  %v3914_v63 = vpop.eup %3913 }
 0x4fc   : > { %v3557_v14 = vpop.f32.mrb[8].mxu0 }
 0x4fd   : > { %v2408_v16 = vmul.f32 %v3896_v52, %v3557_v14  ;;  %v1927_v17 = vpop.f32.mrb[9].mxu0 }
 0x4fe   : > { %v3578_v22 = vpop.f32.mrb[18].mxu1  ;;  %v2407_v23 = vmul.f32 %v3898_v15, %v1927_v17 }
 0x4ff   : > { %v2555_v25 = vcombine.low %v2404_v0, %v2408_v16  ;;  %v2556_v26 = vcombine.high %v2404_v0, %v2408_v16  ;;  %v2188_v27 = vpop.f32.mrb[19].mxu1  ;;  %v2414_v42 = vmul.f32 %v3902_v24, %v3578_v22 }
 0x500   : > { %v2419_v33 = vcombine.low %v2403_v19, %v2407_v23  ;;  %v2420_v32 = vcombine.high %v2403_v19, %v2407_v23  ;;  %v3571_v34 = vpop.f32.mrb[10].mxu0  ;;  %v2413_v43 = vmul.f32 %v3904_v28, %v2188_v27 }
 0x501   : > { %v2563_v36 = vrot.slane %v2555_v25, %v4721_v40  ;;  %v2570_v37 = vrot.slane %v2556_v26, %v4721_v40  ;;  %v2101_v44 = vpop.f32.mrb[11].mxu0  ;;  %v2412_v48 = vmul.f32 %v3900_v18, %v3571_v34 }
 0x502   : > { %v2427_v45 = vrot.slane %v2419_v33, %v4721_v40  ;;  %v2434_v47 = vrot.slane %v2420_v32, %v4721_v40  ;;  %v2411_v38 = vmul.f32 %v3906_v35, %v2101_v44 }
 0x503   : > { %v2619_v46 = vcombine.low %v2563_v36, %v2579_v50  ;;  %v2620_v55 = vcombine.high %v2563_v36, %v2579_v50  ;;  %v2635_v56 = vcombine.low %v2570_v37, %v2586_v21  ;;  %v2636_v59 = vcombine.high %v2570_v37, %v2586_v21 }
 0x504   : > { %v2483_v60 = vcombine.low %v2427_v45, %v2443_v30  ;;  %v2484_v29 = vcombine.high %v2427_v45, %v2443_v30  ;;  %v2499_v61 = vcombine.low %v2434_v47, %v2450_v31  ;;  %v2500_v62 = vcombine.high %v2434_v47, %v2450_v31 }
 0x505   : > { %v3585_v1 = vpop.f32.mrb[12].mxu0  ;;  %v2627_v3 = vrot.slane %v2619_v46, %v4724_v20  ;;  %v2634_v4 = vrot.slane %v2620_v55, %v4724_v20  ;;  %v2643_v57 = vrot.slane %v2635_v56, %v4724_v20  ;;  %v2650_v5 = vrot.slane %v2636_v59, %v4724_v20 }
 0x506   : > { %v3592_v6 = vpop.f32.mrb[20].mxu1  ;;  %v2275_v39 = vpop.f32.mrb[13].mxu0  ;;  %v4739_v58 = vrot.slane %v2483_v60, %v4724_v20  ;;  %v4742_v8 = vrot.slane %v2484_v29, %v4724_v20  ;;  %v4745_v53 = vrot.slane %v2499_v61, %v4724_v20  ;;  %v4748_v9 = vrot.slane %v2500_v62, %v4724_v20 }
 0x507   : > { %v2362_v10 = vpop.f32.mrb[21].mxu1  ;;  %v3354_v12 = vcombine.low %v2627_v3, %v2634_v4  ;;  %v3356_v13 = vcombine.high %v2627_v3, %v2634_v4  ;;  %v3358_v41 = vcombine.low %v2643_v57, %v2650_v5  ;;  %v3360_v54 = vcombine.high %v2643_v57, %v2650_v5 }
 0x508   : > { %v3346_v49 = vcombine.low %v4739_v58, %v4742_v8  ;;  %v3348_v51 = vcombine.high %v4739_v58, %v4742_v8  ;;  %v3350_v52 = vcombine.low %v4745_v53, %v4748_v9  ;;  %v3352_v14 = vcombine.high %v4745_v53, %v4748_v9 }
 0x509   : > { %v2416_v15 = vmul.f32 %v3910_v7, %v3585_v1  ;;  %v2418_v0 = vmul.f32 %v3914_v63, %v3592_v6  ;;  %v2415_v16 = vmul.f32 %v3908_v2, %v2275_v39  ;;  %v2417_v17 = vmul.f32 %v3912_v11, %v2362_v10 }
 0x50a   : > { %v2835_v18 = vrot.slane %v3354_v12, %v4721_v40  ;;  %v2851_v19 = vrot.slane %v3356_v13, %v4721_v40  ;;  %v2867_v22 = vrot.slane %v3358_v41, %v4721_v40  ;;  %v2883_v23 = vrot.slane %v3360_v54, %v4721_v40 }
 0x50b   : > { %v2587_v24 = vcombine.low %v2412_v48, %v2416_v15  ;;  %v2588_v50 = vcombine.high %v2412_v48, %v2416_v15  ;;  %v2603_v21 = vcombine.low %v2414_v42, %v2418_v0  ;;  %v2604_v25 = vcombine.high %v2414_v42, %v2418_v0 }
 0x50c   : > { %v2451_v26 = vcombine.low %v2411_v38, %v2415_v16  ;;  %v2452_v27 = vcombine.high %v2411_v38, %v2415_v16  ;;  %v2467_v28 = vcombine.low %v2413_v43, %v2417_v17  ;;  %v2468_v30 = vcombine.high %v2413_v43, %v2417_v17 }
 0x50d   : > { %v2595_v31 = vrot.slane %v2587_v24, %v4721_v40  ;;  %v2602_v33 = vrot.slane %v2588_v50, %v4721_v40  ;;  %v2611_v32 = vrot.slane %v2603_v21, %v4721_v40  ;;  %v2618_v34 = vrot.slane %v2604_v25, %v4721_v40 }
 0x50e   : > { %v2459_v35 = vrot.slane %v2451_v26, %v4721_v40  ;;  %v2466_v36 = vrot.slane %v2452_v27, %v4721_v40  ;;  %v2475_v37 = vrot.slane %v2467_v28, %v4721_v40  ;;  %v2482_v42 = vrot.slane %v2468_v30, %v4721_v40 }
 0x50f   : > { %v2651_v44 = vcombine.low %v2595_v31, %v2611_v32  ;;  %v2652_v45 = vcombine.high %v2595_v31, %v2611_v32  ;;  %v2667_v47 = vcombine.low %v2602_v33, %v2618_v34  ;;  %v2668_v43 = vcombine.high %v2602_v33, %v2618_v34 }
 0x510   : > { %v2515_v48 = vcombine.low %v2459_v35, %v2475_v37  ;;  %v2516_v38 = vcombine.high %v2459_v35, %v2475_v37  ;;  %v2531_v46 = vcombine.low %v2466_v36, %v2482_v42  ;;  %v2532_v55 = vcombine.high %v2466_v36, %v2482_v42 }
 0x511   : > { %v2659_v56 = vrot.slane %v2651_v44, %v4724_v20  ;;  %v2666_v59 = vrot.slane %v2652_v45, %v4724_v20  ;;  %v2675_v60 = vrot.slane %v2667_v47, %v4724_v20  ;;  %v2682_v29 = vrot.slane %v2668_v43, %v4724_v20 }
 0x512   : > { %v2523_v61 = vrot.slane %v2515_v48, %v4724_v20  ;;  %v2530_v62 = vrot.slane %v2516_v38, %v4724_v20  ;;  %v2539_v1 = vrot.slane %v2531_v46, %v4724_v20  ;;  %v2546_v2 = vrot.slane %v2532_v55, %v4724_v20 }
 0x513   : > { %v3355_v3 = vcombine.low %v2659_v56, %v2666_v59  ;;  %v3357_v4 = vcombine.high %v2659_v56, %v2666_v59  ;;  %v3359_v57 = vcombine.low %v2675_v60, %v2682_v29  ;;  %v3361_v5 = vcombine.high %v2675_v60, %v2682_v29  ;;  %v3039_v56 = vld [vmem:[#allocation11 + $0x8] sm:$0xff] }
 0x514   : > { %v3347_v6 = vcombine.low %v2523_v61, %v2530_v62  ;;  %v3349_v39 = vcombine.high %v2523_v61, %v2530_v62  ;;  %v3351_v7 = vcombine.low %v2539_v1, %v2546_v2  ;;  %v3353_v58 = vcombine.high %v2539_v1, %v2546_v2  ;;  %v3040_v62 = vld [vmem:[#allocation11 + $0x10] sm:$0xff]  ;;  %v3041_v1 = vld [vmem:[#allocation11 + $0x18] sm:$0xff] }
 0x515   : > { %v2892_v8 = vcombine.high %v2835_v18, %v2851_v19  ;;  %v2924_v53 = vcombine.high %v2867_v22, %v2883_v23  ;;  %v2891_v9 = vcombine.low %v2835_v18, %v2851_v19  ;;  %v2923_v10 = vcombine.low %v2867_v22, %v2883_v23 }
 0x516   : > { %v2699_v11 = vrot.slane %v3346_v49, %v4721_v40  ;;  %v2715_v12 = vrot.slane %v3348_v51, %v4721_v40  ;;  %v2731_v13 = vrot.slane %v3350_v52, %v4721_v40  ;;  %v2747_v41 = vrot.slane %v3352_v14, %v4721_v40 }
 0x517   : > { %v2906_v54 = vrot.slane %v2892_v8, %v4724_v20  ;;  %v2938_v63 = vrot.slane %v2924_v53, %v4724_v20  ;;  %v4785_v15 = vrot.slane %v2891_v9, %v4724_v20  ;;  %v4788_v0 = vrot.slane %v2923_v10, %v4724_v20  ;;  %v3042_v10 = vld [vmem:[#allocation11 + $0x20] sm:$0xff] }
 0x518   : > { %v2756_v16 = vcombine.high %v2699_v11, %v2715_v12  ;;  %v2788_v17 = vcombine.high %v2731_v13, %v2747_v41  ;;  %v2755_v18 = vcombine.low %v2699_v11, %v2715_v12  ;;  %v2787_v49 = vcombine.low %v2731_v13, %v2747_v41  ;;  %v3043_v11 = vld [vmem:[#allocation11 + $0x28] sm:$0xff]  ;;  %v3045_v13 = vld [vmem:[#allocation11 + $0x38] sm:$0xff] }
 0x519   : > { %v2957_v19 = vcombine.low %v2906_v54, %v2938_v63  ;;  %v2956_v51 = vcombine.high %v4785_v15, %v4788_v0  ;;  %v2958_v52 = vcombine.high %v2906_v54, %v2938_v63  ;;  %v2706_v14 = vrot.slane %v3347_v6, %v4721_v40 }
 0x51a   : > { %v2770_v22 = vrot.slane %v2756_v16, %v4724_v20  ;;  %v2802_v23 = vrot.slane %v2788_v17, %v4724_v20  ;;  %v4796_v24 = vrot.slane %v2755_v18, %v4724_v20  ;;  %v4799_v50 = vrot.slane %v2787_v49, %v4724_v20 }
 0x51b   : > { %2975 = vrot.lane.b32.xlu1 %v2957_v19, %s4172_s15  ;;  %2967 = vrot.lane.b32.xlu0 %v2956_v51, %s4173_s11  ;;  %v2722_v21 = vrot.slane %v3349_v39, %v4721_v40  ;;  %v2738_v25 = vrot.slane %v3351_v7, %v4721_v40  ;;  %v2754_v26 = vrot.slane %v3353_v58, %v4721_v40 }
 0x51c   : > { %v2822_v27 = vcombine.high %v2770_v22, %v2802_v23  ;;  %v2820_v28 = vcombine.high %v4796_v24, %v4799_v50  ;;  %v2821_v30 = vcombine.low %v2770_v22, %v2802_v23  ;;  %v2842_v31 = vrot.slane %v3355_v3, %v4721_v40 }
 0x51d   : > { %v2771_v33 = vcombine.low %v2706_v14, %v2722_v21  ;;  %v2803_v32 = vcombine.low %v2738_v25, %v2754_v26  ;;  %v2858_v34 = vrot.slane %v3357_v4, %v4721_v40  ;;  %v2874_v35 = vrot.slane %v3359_v57, %v4721_v40 }
 0x51e   : > { %v2890_v36 = vrot.slane %v3361_v5, %v4721_v40  ;;  %v2772_v37 = vcombine.high %v2706_v14, %v2722_v21  ;;  %v2804_v42 = vcombine.high %v2738_v25, %v2754_v26  ;;  %v2955_v44 = vcombine.low %v4785_v15, %v4788_v0  ;;  %v3038_v40 = vld [vmem:[#allocation11] sm:$0xff] }
 0x51f   : > { %2983 = vrot.lane.b32.xlu1 %v2958_v52, %s4174_s12  ;;  %2981 = vrot.lane.b32.xlu0 %v2822_v27, %s4174_s12  ;;  %v2779_v45 = vrot.slane %v2771_v33, %v4724_v20  ;;  %v2811_v47 = vrot.slane %v2803_v32, %v4724_v20  ;;  %v2907_v43 = vcombine.low %v2842_v31, %v2858_v34  ;;  %v3362_v15 = vld [vmem:[%s4908_s5] ss:$0 sm:$0xff] }
 0x520   : > { %v2939_v48 = vcombine.low %v2874_v35, %v2890_v36  ;;  %v2786_v38 = vrot.slane %v2772_v37, %v4724_v20  ;;  %v2818_v46 = vrot.slane %v2804_v42, %v4724_v20  ;;  %v2908_v55 = vcombine.high %v2842_v31, %v2858_v34 }
 0x521   : > { %v2823_v59 = vcombine.low %v2779_v45, %v2811_v47  ;;  %v2824_v60 = vcombine.high %v2779_v45, %v2811_v47  ;;  %v2915_v29 = vrot.slane %v2907_v43, %v4724_v20  ;;  %v2940_v61 = vcombine.high %v2874_v35, %v2890_v36 }
 0x522   : > { %v2947_v2 = vrot.slane %v2939_v48, %v4724_v20  ;;  %v2825_v3 = vcombine.low %v2786_v38, %v2818_v46  ;;  %v2826_v4 = vcombine.high %v2786_v38, %v2818_v46  ;;  %v2922_v57 = vrot.slane %v2908_v55, %v4724_v20 }
 0x523   : > { %2965 = vrot.lane.b32.xlu1 %v2820_v28, %s4173_s11  ;;  %2989 = vrot.lane.b32.xlu0 %v2823_v59, %s4175_s0  ;;  %v2954_v5 = vrot.slane %v2940_v61, %v4724_v20  ;;  %v2819_v6 = vcombine.low %v4796_v24, %v4799_v50  ;;  %v3676_v39 = vpack.c.bf16 %v3039_v56, %v3038_v40  ;;  %v3044_v20 = vld [vmem:[#allocation11 + $0x30] sm:$0xff] }
 0x524   : > { %v2959_v7 = vcombine.low %v2915_v29, %v2947_v2  ;;  %v2960_v58 = vcombine.high %v2915_v29, %v2947_v2  ;;  %v3680_v8 = vpack.c.bf16 %v3041_v1, %v3040_v62  ;;  %v3684_v12 = vpack.c.bf16 %v3043_v11, %v3042_v10 }
 0x525   : > { %v2961_v53 = vcombine.low %v2922_v57, %v2954_v5  ;;  %v2962_v9 = vcombine.high %v2922_v57, %v2954_v5  ;;  %3677 = vmatprep.subr.bf16.mxu0 %v3676_v39  ;;  %v3688_v41 = vpack.c.bf16 %v3045_v13, %v3044_v20 }
 0x526   : > { %3679 = vmatpush3.bf16.msra.mxu0 %v3676_v39 }
 0x527   : > { %2973 = vrot.lane.b32.xlu1 %v2821_v30, %s4172_s15  ;;  %2997 = vrot.lane.b32.xlu0 %v2824_v60, %s4176_s21  ;;  %s4065_s15 = scalar_lea.vmem %s4064_s14, 512 }
 0x528   : > { %3681 = vmatprep.subr.bf16.mxu0 %v3680_v8  ;;  %p4067_p3 = scmp.lt.s32.totalorder %s4065_s15, %s4059_s24 }
 0x52a   : > { %3683 = vmatpush3.bf16.msra.mxu0 %v3680_v8  ;;  %p4068_p5 = por %p4067_p3, %p4066_p13 }
 0x52b   : > { %2991 = vrot.lane.b32.xlu1 %v2959_v7, %s4175_s0  ;;  %3005 = vrot.lane.b32.xlu0 %v2825_v3, %s4177_s16 }
 0x52c   : > { %3685 = vmatprep.subr.bf16.mxu0 %v3684_v12  ;;  %p4069_p7 = pnand %p4068_p5, %p4062_p1 }
 0x52e   : > { %3687 = vmatpush3.bf16.msra.mxu0 %v3684_v12 }
 0x52f   : > { %2999 = vrot.lane.b32.xlu1 %v2960_v58, %s4176_s21  ;;  %3013 = vrot.lane.b32.xlu0 %v2826_v4, %s4178_s7 }
 0x530   : > { %3689 = vmatprep.subr.bf16.mxu0 %v3688_v41 }
 0x532   : > { %3691 = vmatpush3.bf16.msra.mxu0 %v3688_v41 }
 0x533   : > { %3007 = vrot.lane.b32.xlu1 %v2961_v53, %s4177_s16 }
 0x537   : > { %3015 = vrot.lane.b32.xlu1 %v2962_v9, %s4178_s7 }
 0x58d   : > { %v2976_v54 = vpop.permute.xlu1 %2975  ;;  %v2968_v63 = vpop.permute.xlu0 %2967 }
 0x58e   : > { %v3020_v28 = vsel %vm897_vm1, %v2955_v44, %v2968_v63 }
 0x58f   : > { %v3022_v31 = vsel %vm1530_vm2, %v3020_v28, %v2976_v54 }
 0x591   : > { %v2984_v16 = vpop.permute.xlu1 %2983  ;;  %v2982_v17 = vpop.permute.xlu0 %2981 }
 0x592   : > { %v3025_v32 = vsel %vm3023_vm4, %v3022_v31, %v2984_v16 }
 0x595   : > { %v2966_v18 = vpop.permute.xlu1 %2965  ;;  %v2990_v49 = vpop.permute.xlu0 %2989 }
 0x596   : > { %v3019_v19 = vsel %vm897_vm1, %v2819_v6, %v2966_v18 }
 0x599   : > { %v2974_v51 = vpop.permute.xlu1 %2973  ;;  %v2998_v52 = vpop.permute.xlu0 %2997 }
 0x59a   : > { %v3021_v14 = vsel %vm1530_vm2, %v3019_v19, %v2974_v51 }
 0x59b   : > { %v3024_v22 = vsel %vm3023_vm4, %v3021_v14, %v2982_v17 }
 0x59c   : > { %v3027_v23 = vsel %vm3026_vm3, %v3024_v22, %v2990_v49 }
 0x59d   : > { %v2992_v24 = vpop.permute.xlu1 %2991  ;;  %v3006_v50 = vpop.permute.xlu0 %3005  ;;  %v3030_v21 = vsel %vm3029_vm5, %v3027_v23, %v2998_v52 }
 0x59e   : > { %v3033_v25 = vsel %vm3032_vm6, %v3030_v21, %v3006_v50  ;;  %v3028_v34 = vsel %vm3026_vm3, %v3025_v32, %v2992_v24 }
 0x5a1   : > { %v3000_v26 = vpop.permute.xlu1 %2999  ;;  %v3014_v27 = vpop.permute.xlu0 %3013 }
 0x5a2   : > { %v3036_v30 = vsel %vm3035_vm7, %v3033_v25, %v3014_v27  ;;  %v3031_v35 = vsel %vm3029_vm5, %v3028_v34, %v3000_v26 }
 0x5a3   : > { %3609 = vmatprep.mubr.msk.f32.mxu0 %vm387_vm0, %v3036_v30 }
 0x5a5   : > { %v3008_v33 = vpop.permute.xlu1 %3007 }
 0x5a6   : > { %v3034_v36 = vsel %vm3032_vm6, %v3031_v35, %v3008_v33 }
 0x5a9   : > { %v3016_v37 = vpop.permute.xlu1 %3015 }
 0x5aa   : > { %v3037_v42 = vsel %vm3035_vm7, %v3034_v36, %v3016_v37 }
 0x5ab   : > { %3610 = vmatmul.mubr.msk.f32.vlgmr.msra.gmra.mrb[14].mxu0 %vm387_vm0, %v3037_v42 }
 0x67e   : > { %v3611_v0 = vpop.f32.mrb[14].mxu0 }
 0x67f   : > { %v3131_v44 = vadd.f32 %v3611_v0, %v3362_v15  ;;  %v3125_v45 = vpop.f32.mrb[15].mxu0 }
 0x680   : > { %v3126_v47 = vadd.f32 %v3362_v15, %v3125_v45 }
 0x681   : > { %3135 = vst.msk [vmem:[%s370_s27 + $0x8] sm:$0xff] %vm387_vm0, %v3131_v44 }
 0x682   : > { %3134 = vst.msk [vmem:[%s370_s27] sm:$0xff] %vm387_vm0, %v3126_v47 }
 0x683   : > { %4072 = shalt.err (!%p4069_p7)
}
 0x684   : > { %s4073_s12 = scalar_lea.hbm %s4851_s2, 256  ;;  %s4077_s16 = scalar_lea.hbm %s4909_s6, 512 }
 0x685   : > { %p4074_p12 = scmp.ne.s32.totalorder %s4851_s2, %s4073_s12  ;;  %p4078_p9 = scmp.lt.u32.totalorder %s4851_s2, %s4909_s6 }
 0x686   : > { %p4079_p0 = scmp.lt.u32.totalorder %s4077_s16, %s4073_s12  ;;  %p4081_p4 = scmp.lt.u32.totalorder %s4073_s12, %s4851_s2 }
 0x687   : > { %p4075_p6 = pnand %p4074_p12, %p4372_p10 }
 0x688   : > { %p4080_p2 = por %p4079_p0, %p4078_p9 }
 0x689   : > { %p4076_p11 = pneg %p4075_p6 }
 0x68a   : > { %p4082_p8 = por %p4081_p4, %p4080_p2 }
 0x68c   : > { %p4083_p1 = pnand %p4082_p8, %p4076_p11 }
 0x68e   : > { %4086 = shalt.err (!%p4083_p1)
}
 0x68f   : > { %s4180_s28 = smov 128  }
 0x690   : > { %3708 = dma.vmem_to_hbm [thread:$0]  (%p4372_p10), %s4846_s29, 256, %s4851_s2, %s3137_s18, %s4180_s28, %s4180_s28, %s4173_s11  }
 0x691 PF: > { %s4943_s27 = sld [smem:[#allocation18_spill]]  ;;  %s4944_s8 = sld [smem:[#allocation19_spill]] }
 0x692   : > { %p4946_p3 = scmp.ge.s32.totalorder %s4153_s26, 2 }
 0x697   : > { %s3167_s9 = sand.u32 1, %s4943_s27   ;;  %p4945_p13 = scmp.ne.s32.totalorder %s4944_s8, 0 }
 0x698   : > { %s3168_s17 = scalar_lea.sflag [#allocation5], %s3167_s9 }
 0x699   : > { %p3728_p5 = pnand %p4946_p3, %p4945_p13 }
 0x69b   : > { %4128 = dma.done.wait (!%p3728_p5), %s3168_s17, 256  }
 0x69c   : > { %4130 = vsyncadd (!%p3728_p5), %s3168_s17, 4294967040  ;;  %s26_s26 = sadd.s32 1, %s4153_s26   ;;  %s4947_s21 = smov %s4137_s22 }
 0x69d   : > { %p23_p7 = scmp.ge.s32.totalorder %s26_s26, 4   ;;  %s4948_s22 = smov %s4141_s23 }
 0x69e   : > { %s4949_s23 = smov %s4384_s19  ;;  %s4950_s24 = smov %s4149_s25 }
 0x69f   : > { %s4951_s25 = smov %s4953_s10  ;;  %25 = sbr.rel (!%p23_p7) target bundleno = 13 (0xd), region = 118 }
 0x6a6   :  { %3173 = vsyncpa [#allocation4], 1 }
 0x6a7   :  { %3175 = vsyncpa [#allocation4 + $0x1], 1 }
 0x6a8   :  { %3176 = vsyncpa [#allocation7], 1 }
 0x6a9   :  { %3178 = vsyncpa [#allocation7 + $0x1], 1 }
 0x6aa   :  { %3179 = vsyncpa [#allocation10], 1 }
 0x6ab   :  { %3180 = vsyncpa [#allocation5], 1 }
 0x6ac   :  { %3182 = vsyncpa [#allocation5 + $0x1], 1 }

</bundles_post_ra>
